<compile_context>
chip_gen: v6e
topology: v6e:2x2x1
jax: 0.10.0
libtpu: 0.0.40
codegen_flags: <defaults>
</compile_context>

<pallas_src>
import functools

import jax
import jax.numpy as jnp
from jax.experimental import pallas as pl
from jax.experimental.pallas import tpu as pltpu

F32 = jnp.float32
BF16 = jnp.bfloat16


# ---------------------------------------------------------------------------
# math helpers (usable both in-kernel and in the pure-JAX reference)
# ---------------------------------------------------------------------------
def _ln(x, g, b, eps=1e-5):
    m = jnp.mean(x, axis=-1, keepdims=True)
    v = jnp.mean((x - m) ** 2, axis=-1, keepdims=True)
    return (x - m) * jax.lax.rsqrt(v + eps) * g + b


# ---------------------------------------------------------------------------
# fused transformer kernel
# ---------------------------------------------------------------------------
def _fused_transformer_kernel(
    x0_ref, bidc_ref, bidr_ref,
    wqkv_ref, wo_ref, w1_ref, w2_ref, vec_ref,
    projw_ref, projb_ref, projg_ref, projbeta_ref,
    out_ref, x_sc,
    *, num_heads, num_tokens, batch, eps,
):
    l = pl.program_id(0)

    # first grid step: load the (B*S, D) token matrix into the resident scratch
    @pl.when(l == 0)
    def _():
        x_sc[...] = x0_ref[...]

    x = x_sc[...]                                   # (R, D) f32
    R, D = x.shape
    H = num_heads
    hd = D // H
    scale = 1.0 / float(hd) ** 0.5

    # packed per-layer small vectors: (8, 4D) f32
    vec = vec_ref[0]
    b_qkv = vec[0:1, :3 * D]
    b_o = vec[1:2, :D]
    g1 = vec[2:3, :D]
    be1 = vec[3:4, :D]
    b_f1 = vec[4:5, :]                              # width 4D
    b_f2 = vec[5:6, :D]
    g2 = vec[6:7, :D]
    be2 = vec[7:8, :D]

    # additive cross-batch mask, rebuilt in-kernel from O(R) batch-id vectors
    mask = jnp.where(bidc_ref[...] == bidr_ref[...], 0.0, -1e9).astype(F32)

    # --- self-attention: fused QKV projection (bf16 operands, f32 accum) ----
    qkv = jnp.dot(x.astype(BF16), wqkv_ref[0],
                  preferred_element_type=jnp.float32) + b_qkv   # (R, 3D) f32

    heads = []
    for h in range(H):
        lo, hi = h * hd, (h + 1) * hd
        qh = qkv[:, lo:hi]
        kh = qkv[:, D + lo:D + hi]
        vh = qkv[:, 2 * D + lo:2 * D + hi]
        s = jnp.dot(qh.astype(BF16), kh.T.astype(BF16),
                    preferred_element_type=jnp.float32) * scale + mask
        s = s - jnp.max(s, axis=-1, keepdims=True)
        p = jnp.exp(s)
        p = p * pl.reciprocal(jnp.sum(p, axis=-1, keepdims=True), approx=True)
        heads.append(jnp.dot(p.astype(BF16), vh.astype(BF16),
                             preferred_element_type=jnp.float32))   # (R, hd)
    a = jnp.concatenate(heads, axis=-1)                             # (R, D)
    attn_out = jnp.dot(a.astype(BF16), wo_ref[0],                   # one full-K matmul
                       preferred_element_type=jnp.float32)

    y = _ln(x + attn_out + b_o, g1, be1, eps)                       # post-LN

    # --- feed-forward (ReLU) + residual + LN --------------------------------
    h1 = jnp.maximum(
        jnp.dot(y.astype(BF16), w1_ref[0],
                preferred_element_type=jnp.float32) + b_f1, 0.0)
    h2 = jnp.dot(h1.astype(BF16), w2_ref[0],
                 preferred_element_type=jnp.float32) + b_f2
    z = _ln(y + h2, g2, be2, eps)
    x_sc[...] = z

    # --- after the last layer: fused Linear(4D, D) + LayerNorm --------------
    # rows are token-major (row = s*batch + b), so token s occupies the
    # contiguous row block [s*batch, (s+1)*batch) and
    #   out[b] = sum_s  z[s*batch + b] @ proj_w[s*D:(s+1)*D]
    @pl.when(l == pl.num_programs(0) - 1)
    def _():
        feat = jnp.dot(z[0:batch, :], projw_ref[0:D, :],
                       preferred_element_type=jnp.float32)
        for s_tok in range(1, num_tokens):
            feat = feat + jnp.dot(
                z[s_tok * batch:(s_tok + 1) * batch, :],
                projw_ref[s_tok * D:(s_tok + 1) * D, :],
                preferred_element_type=jnp.float32)
        feat = feat + projb_ref[...]
        out_ref[...] = _ln(feat, projg_ref[...], projbeta_ref[...], eps)


# ---------------------------------------------------------------------------
# wrapper
# ---------------------------------------------------------------------------
def drone_transformer_forward(params, features, *, num_heads):
    """features: (vision, video, text, location), each Optional[(B, D)] array."""
    emb = params["mod_emb"]                         # (4, D)
    S, D = emb.shape
    Dff = 4 * D
    B = next(f.shape[0] for f in features if f is not None)

    # modality-embedding add / None -> zeros padding (host-side glue, tiny)
    toks = []
    for idx in range(S):
        f = features[idx]
        if f is None:
            toks.append(jnp.broadcast_to(emb[idx], (B, D)))
        else:
            toks.append(f.astype(F32) + emb[idx])
    # token-major flattening: row r = s*B + b
    x0 = jnp.concatenate(toks, axis=0)              # (S*B, D)
    R = S * B

    # tiny O(R) batch-id vectors (replace the old O(R^2) mask input)
    bid = (jnp.arange(R, dtype=jnp.int32) % B).astype(F32)
    bid_col = bid.reshape(R, 1)
    bid_row = bid.reshape(1, R)

    L = params["wqkv"].shape[0]
    wqkv, wo, w1, w2 = params["wqkv"], params["wo"], params["w1"], params["w2"]

    # pack the 8 tiny per-layer vectors into one (L, 8, 4D) f32 array
    def _pack_vecs():
        rows = []
        for name, width in (("bqkv", 3 * D), ("bo", D), ("g1", D), ("be1", D),
                            ("bf1", Dff), ("bf2", D), ("g2", D), ("be2", D)):
            v = params[name].astype(F32)            # (L, width)
            if width < Dff:
                v = jnp.concatenate([v, jnp.zeros((L, Dff - width), F32)], axis=1)
            rows.append(v[:, None, :])
        return jnp.concatenate(rows, axis=1)        # (L, 8, 4D)

    vecs = _pack_vecs()

    def const_spec(shape):
        return pl.BlockSpec(shape, lambda l, _s=shape: tuple(0 for _ in _s))

    def layer_spec(arr):
        return pl.BlockSpec((1,) + arr.shape[1:],
                            lambda l, _n=arr.ndim: (l,) + (0,) * (_n - 1))

    in_specs = [
        const_spec((R, D)),
        const_spec((R, 1)),
        const_spec((1, R)),
        layer_spec(wqkv), layer_spec(wo), layer_spec(w1), layer_spec(w2),
        layer_spec(vecs),
        const_spec(params["proj_w"].shape),
        const_spec(params["proj_b"].shape),
        const_spec(params["proj_g"].shape),
        const_spec(params["proj_beta"].shape),
    ]

    # explicit VMEM budget (v7x has only 64 MiB): 2x double-buffered bf16 layer
    # weights + packed vectors + resident constants + scratch, with headroom.
    per_layer_w = (D * 3 * D + D * D + D * Dff + Dff * D) * 2      # bf16 bytes
    per_layer_v = 8 * Dff * 4
    const_b = (R * D + 2 * R + Dff * D + 3 * D) * 4
    scratch_b = (R * D + B * D) * 4
    needed = 2 * (per_layer_w + per_layer_v) + 2 * const_b + scratch_b
    vmem_limit = min(int(1.5 * needed) + (16 << 20), 96 << 20)

    kernel = functools.partial(
        _fused_transformer_kernel,
        num_heads=num_heads, num_tokens=S, batch=B, eps=1e-5)

    return pl.pallas_call(
        kernel,
        grid=(L,),
        in_specs=in_specs,
        out_specs=pl.BlockSpec((B, D), lambda l: (0, 0)),
        out_shape=jax.ShapeDtypeStruct((B, D), F32),
        scratch_shapes=[pltpu.VMEM((R, D), F32)],
        compiler_params=pltpu.CompilerParams(
            dimension_semantics=("arbitrary",),
            vmem_limit_bytes=vmem_limit),
    )(x0, bid_col, bid_row, wqkv, wo, w1, w2, vecs,
      params["proj_w"], params["proj_b"], params["proj_g"], params["proj_beta"])


# ---------------------------------------------------------------------------
# deterministic in-script parameters
# ---------------------------------------------------------------------------
def init_params(key, feature_dim, num_layers):
    D = feature_dim
    Dff = 4 * D
    keys = iter(jax.random.split(key, 16))

    def w(shape, scale=0.05):
        return scale * jax.random.normal(next(keys), shape, dtype=F32)

    p = {"mod_emb": jax.random.normal(next(keys), (4, D), dtype=F32)}
    # big stacked per-layer matrices stored in bf16 (the weight stream is the
    # HBM-bandwidth bottleneck); vectors / LN params / projection stay f32.
    p["wqkv"] = w((num_layers, D, 3 * D)).astype(BF16)  # cols [Q | K | V]
    p["wo"] = w((num_layers, D, D)).astype(BF16)
    p["w1"] = w((num_layers, D, Dff)).astype(BF16)
    p["w2"] = w((num_layers, Dff, D)).astype(BF16)
    p["bqkv"] = w((num_layers, 3 * D), 0.02)
    p["bo"] = w((num_layers, D), 0.02)
    p["g1"] = jnp.ones((num_layers, D), F32)
    p["be1"] = jnp.zeros((num_layers, D), F32)
    p["bf1"] = w((num_layers, Dff), 0.02)
    p["bf2"] = w((num_layers, D), 0.02)
    p["g2"] = jnp.ones((num_layers, D), F32)
    p["be2"] = jnp.zeros((num_layers, D), F32)
    # output projection: Linear(4D, D) + LayerNorm(D)
    p["proj_w"] = w((4 * D, D))
    p["proj_b"] = w((1, D), 0.02)
    p["proj_g"] = jnp.ones((1, D), F32)
    p["proj_beta"] = jnp.zeros((1, D), F32)
    return p


# ---------------------------------------------------------------------------
# pure-JAX reference (mirrors PyTorch DroneTransformer.forward, eval mode)
# ---------------------------------------------------------------------------
def _reference_forward(params, features, *, num_heads):
    hp = jax.lax.Precision.HIGHEST
    up = lambda a: a.astype(F32)
    emb = params["mod_emb"]
    S, D = emb.shape
    B = next(f.shape[0] for f in features if f is not None)
    toks = [(jnp.zeros((B, D), F32) if f is None else f.astype(F32)) + emb[i]
            for i, f in enumerate(features)]
    x = jnp.stack(toks, axis=1)                                  # (B, 4, D)
    H = num_heads
    hd = D // H
    L = params["wqkv"].shape[0]
    for l in range(L):
        qkv = jnp.einsum("bsd,de->bse", x, up(params["wqkv"][l]),
                         precision=hp) + params["bqkv"][l]
        q, k, v = qkv[..., :D], qkv[..., D:2 * D], qkv[..., 2 * D:]
        q = q.reshape(B, S, H, hd).transpose(0, 2, 1, 3)
        k = k.reshape(B, S, H, hd).transpose(0, 2, 1, 3)
        v = v.reshape(B, S, H, hd).transpose(0, 2, 1, 3)
        sc = jnp.einsum("bhqd,bhkd->bhqk", q, k, precision=hp) / (hd ** 0.5)
        pr = jax.nn.softmax(sc, axis=-1)
        a = jnp.einsum("bhqk,bhkd->bhqd", pr, v, precision=hp)
        a = a.transpose(0, 2, 1, 3).reshape(B, S, D)
        y = x + jnp.einsum("bsd,de->bse", a, up(params["wo"][l]),
                           precision=hp) + params["bo"][l]
        y = _ln(y, params["g1"][l], params["be1"][l])
        h1 = jax.nn.relu(jnp.einsum("bsd,df->bsf", y, up(params["w1"][l]),
                                    precision=hp) + params["bf1"][l])
        h2 = jnp.einsum("bsf,fd->bsd", h1, up(params["w2"][l]),
                        precision=hp) + params["bf2"][l]
        x = _ln(y + h2, params["g2"][l], params["be2"][l])
    flat = x.reshape(B, S * D)
    feat = jnp.dot(flat, params["proj_w"], precision=hp) + params["proj_b"]
    return _ln(feat, params["proj_g"], params["proj_beta"])


# ---------------------------------------------------------------------------
if __name__ == "__main__":
    FEATURE_DIM = 128    # lane-dense last dim (module default: 256)
    NUM_HEADS = 4        # must divide FEATURE_DIM (module default: 8 @ 256)
    NUM_LAYERS = 2       # small stand-in for the module default 6
    BATCH = 2            # S*B = 8 rows -> one full f32 sublane tile

    key = jax.random.PRNGKey(0)
    pkey, vkey, lkey = jax.random.split(key, 3)
    params = init_params(pkey, FEATURE_DIM, NUM_LAYERS)

    vision = jax.random.normal(vkey, (BATCH, FEATURE_DIM), dtype=F32)
    location = jax.random.normal(lkey, (BATCH, FEATURE_DIM), dtype=F32)
    # EncodedFeatures order: (vision, video, text, location); missing -> None
    features = (vision, None, None, location)

    out = drone_transformer_forward(params, features, num_heads=NUM_HEADS)
    out = jax.block_until_ready(out)
    assert out.shape == (BATCH, FEATURE_DIM)

    ref = jax.block_until_ready(
        _reference_forward(params, features, num_heads=NUM_HEADS))
    max_err = float(jnp.max(jnp.abs(out - ref)))
    # bf16 matmul operands vs HIGHEST-precision f32 reference -> ~1e-2 level
    assert jnp.allclose(out, ref, atol=3e-2, rtol=3e-2), f"max_err={max_err}"
    print("KERNEL_OK")
</pallas_src>

<mosaic_0001>
module attributes {stable_mosaic.version = 11 : i64} {
  func.func @_fused_transformer_kernel(%arg0: i32, %arg1: memref<8x128xf32, #tpu.memory_space<vmem>>, %arg2: memref<8x1xf32, #tpu.memory_space<vmem>>, %arg3: memref<1x8xf32, #tpu.memory_space<vmem>>, %arg4: memref<1x128x384xbf16, #tpu.memory_space<vmem>>, %arg5: memref<1x128x128xbf16, #tpu.memory_space<vmem>>, %arg6: memref<1x128x512xbf16, #tpu.memory_space<vmem>>, %arg7: memref<1x512x128xbf16, #tpu.memory_space<vmem>>, %arg8: memref<1x8x512xf32, #tpu.memory_space<vmem>>, %arg9: memref<512x128xf32, #tpu.memory_space<vmem>>, %arg10: memref<1x128xf32, #tpu.memory_space<vmem>>, %arg11: memref<1x128xf32, #tpu.memory_space<vmem>>, %arg12: memref<1x128xf32, #tpu.memory_space<vmem>>, %arg13: memref<2x128xf32, #tpu.memory_space<vmem>>, %arg14: memref<8x128xf32, #tpu.memory_space<vmem>>) attributes {dimension_semantics = [#tpu.dimension_semantics<arbitrary>], iteration_bounds = array<i64: 2>, scalar_prefetch = 0 : i64, scratch_operands = 1 : i64, tpu.core_type = #tpu.core_type<tc>, window_params = [{pipeline_mode = #tpu.pipeline_mode<synchronous>, transform_indices = @transform_0, window_bounds = array<i64: 8, 128>}, {pipeline_mode = #tpu.pipeline_mode<synchronous>, transform_indices = @transform_1, window_bounds = array<i64: 8, 1>}, {pipeline_mode = #tpu.pipeline_mode<synchronous>, transform_indices = @transform_2, window_bounds = array<i64: 1, 8>}, {transform_indices = @transform_3, window_bounds = array<i64: 1, 128, 384>}, {transform_indices = @transform_4, window_bounds = array<i64: 1, 128, 128>}, {transform_indices = @transform_5, window_bounds = array<i64: 1, 128, 512>}, {transform_indices = @transform_6, window_bounds = array<i64: 1, 512, 128>}, {transform_indices = @transform_7, window_bounds = array<i64: 1, 8, 512>}, {pipeline_mode = #tpu.pipeline_mode<synchronous>, transform_indices = @transform_8, window_bounds = array<i64: 512, 128>}, {pipeline_mode = #tpu.pipeline_mode<synchronous>, transform_indices = @transform_9, window_bounds = array<i64: 1, 128>}, {pipeline_mode = #tpu.pipeline_mode<synchronous>, transform_indices = @transform_10, window_bounds = array<i64: 1, 128>}, {pipeline_mode = #tpu.pipeline_mode<synchronous>, transform_indices = @transform_11, window_bounds = array<i64: 1, 128>}, {pipeline_mode = #tpu.pipeline_mode<synchronous>, transform_indices = @transform_12, window_bounds = array<i64: 2, 128>}]} {
    %c0_i32 = arith.constant 0 : i32
    %0 = arith.cmpi eq, %arg0, %c0_i32 : i32
    %1 = arith.extui %0 : i1 to i32
    %c0_i32_0 = arith.constant 0 : i32
    %2 = arith.cmpi ne, %1, %c0_i32_0 : i32
    scf.if %2 {
      %c0_60 = arith.constant 0 : index
      %c0_61 = arith.constant 0 : index
      %191 = vector.load %arg1[%c0_60, %c0_61] : memref<8x128xf32, #tpu.memory_space<vmem>>, vector<8x128xf32>
      %c0_62 = arith.constant 0 : index
      %c0_63 = arith.constant 0 : index
      %192 = vector.load %arg14[%c0_62, %c0_63] : memref<8x128xf32, #tpu.memory_space<vmem>>, vector<8x128xf32>
      tpu.vector_store %arg14[%c0_62, %c0_63], %191 {strides = array<i32>} : memref<8x128xf32, #tpu.memory_space<vmem>>, vector<8x128xf32>,
    } else {
    }
    %c0 = arith.constant 0 : index
    %c0_1 = arith.constant 0 : index
    %3 = vector.load %arg14[%c0, %c0_1] : memref<8x128xf32, #tpu.memory_space<vmem>>, vector<8x128xf32>
    %c0_2 = arith.constant 0 : index
    %c0_3 = arith.constant 0 : index
    %c0_4 = arith.constant 0 : index
    %4 = vector.load %arg8[%c0_2, %c0_3, %c0_4] : memref<1x8x512xf32, #tpu.memory_space<vmem>>, vector<1x8x512xf32>
    %5 = vector.shape_cast %4 : vector<1x8x512xf32> to vector<8x512xf32>
    %6 = vector.extract_strided_slice %5 {offsets = [0, 0], sizes = [1, 384], strides = [1, 1]} : vector<8x512xf32> to vector<1x384xf32>
    %7 = vector.extract_strided_slice %5 {offsets = [1, 0], sizes = [1, 128], strides = [1, 1]} : vector<8x512xf32> to vector<1x128xf32>
    %8 = vector.extract_strided_slice %5 {offsets = [2, 0], sizes = [1, 128], strides = [1, 1]} : vector<8x512xf32> to vector<1x128xf32>
    %9 = vector.extract_strided_slice %5 {offsets = [3, 0], sizes = [1, 128], strides = [1, 1]} : vector<8x512xf32> to vector<1x128xf32>
    %10 = vector.extract_strided_slice %5 {offsets = [4, 0], sizes = [1, 512], strides = [1, 1]} : vector<8x512xf32> to vector<1x512xf32>
    %11 = vector.extract_strided_slice %5 {offsets = [5, 0], sizes = [1, 128], strides = [1, 1]} : vector<8x512xf32> to vector<1x128xf32>
    %12 = vector.extract_strided_slice %5 {offsets = [6, 0], sizes = [1, 128], strides = [1, 1]} : vector<8x512xf32> to vector<1x128xf32>
    %13 = vector.extract_strided_slice %5 {offsets = [7, 0], sizes = [1, 128], strides = [1, 1]} : vector<8x512xf32> to vector<1x128xf32>
    %c0_5 = arith.constant 0 : index
    %c0_6 = arith.constant 0 : index
    %14 = vector.load %arg2[%c0_5, %c0_6] : memref<8x1xf32, #tpu.memory_space<vmem>>, vector<8x1xf32>
    %c0_7 = arith.constant 0 : index
    %c0_8 = arith.constant 0 : index
    %15 = vector.load %arg3[%c0_7, %c0_8] : memref<1x8xf32, #tpu.memory_space<vmem>>, vector<1x8xf32>
    %16 = vector.broadcast %14 : vector<8x1xf32> to vector<8x8xf32>
    %17 = vector.broadcast %15 : vector<1x8xf32> to vector<8x8xf32>
    %18 = arith.cmpf oeq, %16, %17 : vector<8x8xf32>
    %cst = arith.constant 0.000000e+00 : f32
    %cst_9 = arith.constant -1.000000e+09 : f32
    %19 = vector.broadcast %cst : f32 to vector<8x8xf32>
    %20 = vector.broadcast %cst_9 : f32 to vector<8x8xf32>
    %21 = arith.select %18, %19, %20 : vector<8x8xi1>, vector<8x8xf32>
    %22 = arith.truncf %3 : vector<8x128xf32> to vector<8x128xbf16>
    %c0_10 = arith.constant 0 : index
    %c0_11 = arith.constant 0 : index
    %c0_12 = arith.constant 0 : index
    %23 = vector.load %arg4[%c0_10, %c0_11, %c0_12] : memref<1x128x384xbf16, #tpu.memory_space<vmem>>, vector<1x128x384xbf16>
    %24 = vector.shape_cast %23 : vector<1x128x384xbf16> to vector<128x384xbf16>
    %cst_13 = arith.constant dense<0.000000e+00> : vector<8x384xf32>
    %25 = tpu.matmul %22, %24, %cst_13 {dimension_numbers = #tpu.dot_dimension_numbers<[1], [0], [0], [1], [0, 0, 1, 1], [], []>} : vector<8x128xbf16>, vector<128x384xbf16>, vector<8x384xf32> -> vector<8x384xf32>
    %26 = vector.broadcast %6 : vector<1x384xf32> to vector<8x384xf32>
    %27 = arith.addf %25, %26 : vector<8x384xf32>
    %28 = vector.extract_strided_slice %27 {offsets = [0, 0], sizes = [8, 32], strides = [1, 1]} : vector<8x384xf32> to vector<8x32xf32>
    %29 = vector.extract_strided_slice %27 {offsets = [0, 128], sizes = [8, 32], strides = [1, 1]} : vector<8x384xf32> to vector<8x32xf32>
    %30 = vector.extract_strided_slice %27 {offsets = [0, 256], sizes = [8, 32], strides = [1, 1]} : vector<8x384xf32> to vector<8x32xf32>
    %31 = arith.truncf %28 : vector<8x32xf32> to vector<8x32xbf16>
    %32 = tpu.transpose %29, [1, 0] : vector<8x32xf32> -> vector<32x8xf32>
    %33 = arith.truncf %32 : vector<32x8xf32> to vector<32x8xbf16>
    %cst_14 = arith.constant dense<0.000000e+00> : vector<8x8xf32>
    %34 = tpu.matmul %31, %33, %cst_14 {dimension_numbers = #tpu.dot_dimension_numbers<[1], [0], [0], [1], [0, 0, 1, 1], [], []>} : vector<8x32xbf16>, vector<32x8xbf16>, vector<8x8xf32> -> vector<8x8xf32>
    %cst_15 = arith.constant 0.176776692 : f32
    %35 = vector.broadcast %cst_15 : f32 to vector<8x8xf32>
    %36 = arith.mulf %34, %35 : vector<8x8xf32>
    %37 = arith.addf %36, %21 : vector<8x8xf32>
    %cst_16 = arith.constant dense<0xFF800000> : vector<8xf32>
    %38 = vector.multi_reduction <maximumf>, %37, %cst_16 [1] : vector<8x8xf32> to vector<8xf32>
    %39 = vector.shape_cast %38 : vector<8xf32> to vector<8x1xf32>
    %40 = vector.broadcast %39 : vector<8x1xf32> to vector<8x8xf32>
    %41 = arith.subf %37, %40 : vector<8x8xf32>
    %42 = math.exp %41 : vector<8x8xf32>
    %cst_17 = arith.constant dense<0.000000e+00> : vector<8xf32>
    %43 = vector.multi_reduction <add>, %42, %cst_17 [1] : vector<8x8xf32> to vector<8xf32>
    %44 = vector.shape_cast %43 : vector<8xf32> to vector<8x1xf32>
    %45 = tpu.reciprocal %44 {approx = true} : vector<8x1xf32> -> vector<8x1xf32>
    %46 = vector.broadcast %45 : vector<8x1xf32> to vector<8x8xf32>
    %47 = arith.mulf %42, %46 : vector<8x8xf32>
    %48 = arith.truncf %47 : vector<8x8xf32> to vector<8x8xbf16>
    %49 = arith.truncf %30 : vector<8x32xf32> to vector<8x32xbf16>
    %cst_18 = arith.constant dense<0.000000e+00> : vector<8x32xf32>
    %50 = tpu.matmul %48, %49, %cst_18 {dimension_numbers = #tpu.dot_dimension_numbers<[1], [0], [0], [1], [0, 0, 1, 1], [], []>} : vector<8x8xbf16>, vector<8x32xbf16>, vector<8x32xf32> -> vector<8x32xf32>
    %51 = vector.extract_strided_slice %27 {offsets = [0, 32], sizes = [8, 32], strides = [1, 1]} : vector<8x384xf32> to vector<8x32xf32>
    %52 = vector.extract_strided_slice %27 {offsets = [0, 160], sizes = [8, 32], strides = [1, 1]} : vector<8x384xf32> to vector<8x32xf32>
    %53 = vector.extract_strided_slice %27 {offsets = [0, 288], sizes = [8, 32], strides = [1, 1]} : vector<8x384xf32> to vector<8x32xf32>
    %54 = arith.truncf %51 : vector<8x32xf32> to vector<8x32xbf16>
    %55 = tpu.transpose %52, [1, 0] : vector<8x32xf32> -> vector<32x8xf32>
    %56 = arith.truncf %55 : vector<32x8xf32> to vector<32x8xbf16>
    %cst_19 = arith.constant dense<0.000000e+00> : vector<8x8xf32>
    %57 = tpu.matmul %54, %56, %cst_19 {dimension_numbers = #tpu.dot_dimension_numbers<[1], [0], [0], [1], [0, 0, 1, 1], [], []>} : vector<8x32xbf16>, vector<32x8xbf16>, vector<8x8xf32> -> vector<8x8xf32>
    %cst_20 = arith.constant 0.176776692 : f32
    %58 = vector.broadcast %cst_20 : f32 to vector<8x8xf32>
    %59 = arith.mulf %57, %58 : vector<8x8xf32>
    %60 = arith.addf %59, %21 : vector<8x8xf32>
    %cst_21 = arith.constant dense<0xFF800000> : vector<8xf32>
    %61 = vector.multi_reduction <maximumf>, %60, %cst_21 [1] : vector<8x8xf32> to vector<8xf32>
    %62 = vector.shape_cast %61 : vector<8xf32> to vector<8x1xf32>
    %63 = vector.broadcast %62 : vector<8x1xf32> to vector<8x8xf32>
    %64 = arith.subf %60, %63 : vector<8x8xf32>
    %65 = math.exp %64 : vector<8x8xf32>
    %cst_22 = arith.constant dense<0.000000e+00> : vector<8xf32>
    %66 = vector.multi_reduction <add>, %65, %cst_22 [1] : vector<8x8xf32> to vector<8xf32>
    %67 = vector.shape_cast %66 : vector<8xf32> to vector<8x1xf32>
    %68 = tpu.reciprocal %67 {approx = true} : vector<8x1xf32> -> vector<8x1xf32>
    %69 = vector.broadcast %68 : vector<8x1xf32> to vector<8x8xf32>
    %70 = arith.mulf %65, %69 : vector<8x8xf32>
    %71 = arith.truncf %70 : vector<8x8xf32> to vector<8x8xbf16>
    %72 = arith.truncf %53 : vector<8x32xf32> to vector<8x32xbf16>
    %cst_23 = arith.constant dense<0.000000e+00> : vector<8x32xf32>
    %73 = tpu.matmul %71, %72, %cst_23 {dimension_numbers = #tpu.dot_dimension_numbers<[1], [0], [0], [1], [0, 0, 1, 1], [], []>} : vector<8x8xbf16>, vector<8x32xbf16>, vector<8x32xf32> -> vector<8x32xf32>
    %74 = vector.extract_strided_slice %27 {offsets = [0, 64], sizes = [8, 32], strides = [1, 1]} : vector<8x384xf32> to vector<8x32xf32>
    %75 = vector.extract_strided_slice %27 {offsets = [0, 192], sizes = [8, 32], strides = [1, 1]} : vector<8x384xf32> to vector<8x32xf32>
    %76 = vector.extract_strided_slice %27 {offsets = [0, 320], sizes = [8, 32], strides = [1, 1]} : vector<8x384xf32> to vector<8x32xf32>
    %77 = arith.truncf %74 : vector<8x32xf32> to vector<8x32xbf16>
    %78 = tpu.transpose %75, [1, 0] : vector<8x32xf32> -> vector<32x8xf32>
    %79 = arith.truncf %78 : vector<32x8xf32> to vector<32x8xbf16>
    %cst_24 = arith.constant dense<0.000000e+00> : vector<8x8xf32>
    %80 = tpu.matmul %77, %79, %cst_24 {dimension_numbers = #tpu.dot_dimension_numbers<[1], [0], [0], [1], [0, 0, 1, 1], [], []>} : vector<8x32xbf16>, vector<32x8xbf16>, vector<8x8xf32> -> vector<8x8xf32>
    %cst_25 = arith.constant 0.176776692 : f32
    %81 = vector.broadcast %cst_25 : f32 to vector<8x8xf32>
    %82 = arith.mulf %80, %81 : vector<8x8xf32>
    %83 = arith.addf %82, %21 : vector<8x8xf32>
    %cst_26 = arith.constant dense<0xFF800000> : vector<8xf32>
    %84 = vector.multi_reduction <maximumf>, %83, %cst_26 [1] : vector<8x8xf32> to vector<8xf32>
    %85 = vector.shape_cast %84 : vector<8xf32> to vector<8x1xf32>
    %86 = vector.broadcast %85 : vector<8x1xf32> to vector<8x8xf32>
    %87 = arith.subf %83, %86 : vector<8x8xf32>
    %88 = math.exp %87 : vector<8x8xf32>
    %cst_27 = arith.constant dense<0.000000e+00> : vector<8xf32>
    %89 = vector.multi_reduction <add>, %88, %cst_27 [1] : vector<8x8xf32> to vector<8xf32>
    %90 = vector.shape_cast %89 : vector<8xf32> to vector<8x1xf32>
    %91 = tpu.reciprocal %90 {approx = true} : vector<8x1xf32> -> vector<8x1xf32>
    %92 = vector.broadcast %91 : vector<8x1xf32> to vector<8x8xf32>
    %93 = arith.mulf %88, %92 : vector<8x8xf32>
    %94 = arith.truncf %93 : vector<8x8xf32> to vector<8x8xbf16>
    %95 = arith.truncf %76 : vector<8x32xf32> to vector<8x32xbf16>
    %cst_28 = arith.constant dense<0.000000e+00> : vector<8x32xf32>
    %96 = tpu.matmul %94, %95, %cst_28 {dimension_numbers = #tpu.dot_dimension_numbers<[1], [0], [0], [1], [0, 0, 1, 1], [], []>} : vector<8x8xbf16>, vector<8x32xbf16>, vector<8x32xf32> -> vector<8x32xf32>
    %97 = vector.extract_strided_slice %27 {offsets = [0, 96], sizes = [8, 32], strides = [1, 1]} : vector<8x384xf32> to vector<8x32xf32>
    %98 = vector.extract_strided_slice %27 {offsets = [0, 224], sizes = [8, 32], strides = [1, 1]} : vector<8x384xf32> to vector<8x32xf32>
    %99 = vector.extract_strided_slice %27 {offsets = [0, 352], sizes = [8, 32], strides = [1, 1]} : vector<8x384xf32> to vector<8x32xf32>
    %100 = arith.truncf %97 : vector<8x32xf32> to vector<8x32xbf16>
    %101 = tpu.transpose %98, [1, 0] : vector<8x32xf32> -> vector<32x8xf32>
    %102 = arith.truncf %101 : vector<32x8xf32> to vector<32x8xbf16>
    %cst_29 = arith.constant dense<0.000000e+00> : vector<8x8xf32>
    %103 = tpu.matmul %100, %102, %cst_29 {dimension_numbers = #tpu.dot_dimension_numbers<[1], [0], [0], [1], [0, 0, 1, 1], [], []>} : vector<8x32xbf16>, vector<32x8xbf16>, vector<8x8xf32> -> vector<8x8xf32>
    %cst_30 = arith.constant 0.176776692 : f32
    %104 = vector.broadcast %cst_30 : f32 to vector<8x8xf32>
    %105 = arith.mulf %103, %104 : vector<8x8xf32>
    %106 = arith.addf %105, %21 : vector<8x8xf32>
    %cst_31 = arith.constant dense<0xFF800000> : vector<8xf32>
    %107 = vector.multi_reduction <maximumf>, %106, %cst_31 [1] : vector<8x8xf32> to vector<8xf32>
    %108 = vector.shape_cast %107 : vector<8xf32> to vector<8x1xf32>
    %109 = vector.broadcast %108 : vector<8x1xf32> to vector<8x8xf32>
    %110 = arith.subf %106, %109 : vector<8x8xf32>
    %111 = math.exp %110 : vector<8x8xf32>
    %cst_32 = arith.constant dense<0.000000e+00> : vector<8xf32>
    %112 = vector.multi_reduction <add>, %111, %cst_32 [1] : vector<8x8xf32> to vector<8xf32>
    %113 = vector.shape_cast %112 : vector<8xf32> to vector<8x1xf32>
    %114 = tpu.reciprocal %113 {approx = true} : vector<8x1xf32> -> vector<8x1xf32>
    %115 = vector.broadcast %114 : vector<8x1xf32> to vector<8x8xf32>
    %116 = arith.mulf %111, %115 : vector<8x8xf32>
    %117 = arith.truncf %116 : vector<8x8xf32> to vector<8x8xbf16>
    %118 = arith.truncf %99 : vector<8x32xf32> to vector<8x32xbf16>
    %cst_33 = arith.constant dense<0.000000e+00> : vector<8x32xf32>
    %119 = tpu.matmul %117, %118, %cst_33 {dimension_numbers = #tpu.dot_dimension_numbers<[1], [0], [0], [1], [0, 0, 1, 1], [], []>} : vector<8x8xbf16>, vector<8x32xbf16>, vector<8x32xf32> -> vector<8x32xf32>
    %120 = tpu.concatenate %50, %73, %96, %119 in 1 : vector<8x32xf32>, vector<8x32xf32>, vector<8x32xf32>, vector<8x32xf32> -> vector<8x128xf32>
    %121 = arith.truncf %120 : vector<8x128xf32> to vector<8x128xbf16>
    %c0_34 = arith.constant 0 : index
    %c0_35 = arith.constant 0 : index
    %c0_36 = arith.constant 0 : index
    %122 = vector.load %arg5[%c0_34, %c0_35, %c0_36] : memref<1x128x128xbf16, #tpu.memory_space<vmem>>, vector<1x128x128xbf16>
    %123 = vector.shape_cast %122 : vector<1x128x128xbf16> to vector<128x128xbf16>
    %cst_37 = arith.constant dense<0.000000e+00> : vector<8x128xf32>
    %124 = tpu.matmul %121, %123, %cst_37 {dimension_numbers = #tpu.dot_dimension_numbers<[1], [0], [0], [1], [0, 0, 1, 1], [], []>} : vector<8x128xbf16>, vector<128x128xbf16>, vector<8x128xf32> -> vector<8x128xf32>
    %125 = arith.addf %3, %124 : vector<8x128xf32>
    %126 = vector.broadcast %7 : vector<1x128xf32> to vector<8x128xf32>
    %127 = arith.addf %125, %126 : vector<8x128xf32>
    %cst_38 = arith.constant dense<0.000000e+00> : vector<8xf32>
    %128 = vector.multi_reduction <add>, %127, %cst_38 [1] : vector<8x128xf32> to vector<8xf32>
    %129 = vector.shape_cast %128 : vector<8xf32> to vector<8x1xf32>
    %cst_39 = arith.constant 1.280000e+02 : f32
    %130 = vector.broadcast %cst_39 : f32 to vector<8x1xf32>
    %131 = arith.divf %129, %130 : vector<8x1xf32>
    %132 = vector.broadcast %131 : vector<8x1xf32> to vector<8x128xf32>
    %133 = arith.subf %127, %132 : vector<8x128xf32>
    %134 = arith.mulf %133, %133 : vector<8x128xf32>
    %cst_40 = arith.constant dense<0.000000e+00> : vector<8xf32>
    %135 = vector.multi_reduction <add>, %134, %cst_40 [1] : vector<8x128xf32> to vector<8xf32>
    %136 = vector.shape_cast %135 : vector<8xf32> to vector<8x1xf32>
    %cst_41 = arith.constant 1.280000e+02 : f32
    %137 = vector.broadcast %cst_41 : f32 to vector<8x1xf32>
    %138 = arith.divf %136, %137 : vector<8x1xf32>
    %139 = vector.broadcast %131 : vector<8x1xf32> to vector<8x128xf32>
    %140 = arith.subf %127, %139 : vector<8x128xf32>
    %cst_42 = arith.constant 9.99999974E-6 : f32
    %141 = vector.broadcast %cst_42 : f32 to vector<8x1xf32>
    %142 = arith.addf %138, %141 : vector<8x1xf32>
    %143 = math.rsqrt %142 : vector<8x1xf32>
    %144 = vector.broadcast %143 : vector<8x1xf32> to vector<8x128xf32>
    %145 = arith.mulf %140, %144 : vector<8x128xf32>
    %146 = vector.broadcast %8 : vector<1x128xf32> to vector<8x128xf32>
    %147 = arith.mulf %145, %146 : vector<8x128xf32>
    %148 = vector.broadcast %9 : vector<1x128xf32> to vector<8x128xf32>
    %149 = arith.addf %147, %148 : vector<8x128xf32>
    %150 = arith.truncf %149 : vector<8x128xf32> to vector<8x128xbf16>
    %c0_43 = arith.constant 0 : index
    %c0_44 = arith.constant 0 : index
    %c0_45 = arith.constant 0 : index
    %151 = vector.load %arg6[%c0_43, %c0_44, %c0_45] : memref<1x128x512xbf16, #tpu.memory_space<vmem>>, vector<1x128x512xbf16>
    %152 = vector.shape_cast %151 : vector<1x128x512xbf16> to vector<128x512xbf16>
    %cst_46 = arith.constant dense<0.000000e+00> : vector<8x512xf32>
    %153 = tpu.matmul %150, %152, %cst_46 {dimension_numbers = #tpu.dot_dimension_numbers<[1], [0], [0], [1], [0, 0, 1, 1], [], []>} : vector<8x128xbf16>, vector<128x512xbf16>, vector<8x512xf32> -> vector<8x512xf32>
    %154 = vector.broadcast %10 : vector<1x512xf32> to vector<8x512xf32>
    %155 = arith.addf %153, %154 : vector<8x512xf32>
    %cst_47 = arith.constant 0.000000e+00 : f32
    %156 = vector.broadcast %cst_47 : f32 to vector<8x512xf32>
    %157 = arith.maximumf %155, %156 : vector<8x512xf32>
    %158 = arith.truncf %157 : vector<8x512xf32> to vector<8x512xbf16>
    %c0_48 = arith.constant 0 : index
    %c0_49 = arith.constant 0 : index
    %c0_50 = arith.constant 0 : index
    %159 = vector.load %arg7[%c0_48, %c0_49, %c0_50] : memref<1x512x128xbf16, #tpu.memory_space<vmem>>, vector<1x512x128xbf16>
    %160 = vector.shape_cast %159 : vector<1x512x128xbf16> to vector<512x128xbf16>
    %cst_51 = arith.constant dense<0.000000e+00> : vector<8x128xf32>
    %161 = tpu.matmul %158, %160, %cst_51 {dimension_numbers = #tpu.dot_dimension_numbers<[1], [0], [0], [1], [0, 0, 1, 1], [], []>} : vector<8x512xbf16>, vector<512x128xbf16>, vector<8x128xf32> -> vector<8x128xf32>
    %162 = vector.broadcast %11 : vector<1x128xf32> to vector<8x128xf32>
    %163 = arith.addf %161, %162 : vector<8x128xf32>
    %164 = arith.addf %149, %163 : vector<8x128xf32>
    %cst_52 = arith.constant dense<0.000000e+00> : vector<8xf32>
    %165 = vector.multi_reduction <add>, %164, %cst_52 [1] : vector<8x128xf32> to vector<8xf32>
    %166 = vector.shape_cast %165 : vector<8xf32> to vector<8x1xf32>
    %cst_53 = arith.constant 1.280000e+02 : f32
    %167 = vector.broadcast %cst_53 : f32 to vector<8x1xf32>
    %168 = arith.divf %166, %167 : vector<8x1xf32>
    %169 = vector.broadcast %168 : vector<8x1xf32> to vector<8x128xf32>
    %170 = arith.subf %164, %169 : vector<8x128xf32>
    %171 = arith.mulf %170, %170 : vector<8x128xf32>
    %cst_54 = arith.constant dense<0.000000e+00> : vector<8xf32>
    %172 = vector.multi_reduction <add>, %171, %cst_54 [1] : vector<8x128xf32> to vector<8xf32>
    %173 = vector.shape_cast %172 : vector<8xf32> to vector<8x1xf32>
    %cst_55 = arith.constant 1.280000e+02 : f32
    %174 = vector.broadcast %cst_55 : f32 to vector<8x1xf32>
    %175 = arith.divf %173, %174 : vector<8x1xf32>
    %176 = vector.broadcast %168 : vector<8x1xf32> to vector<8x128xf32>
    %177 = arith.subf %164, %176 : vector<8x128xf32>
    %cst_56 = arith.constant 9.99999974E-6 : f32
    %178 = vector.broadcast %cst_56 : f32 to vector<8x1xf32>
    %179 = arith.addf %175, %178 : vector<8x1xf32>
    %180 = math.rsqrt %179 : vector<8x1xf32>
    %181 = vector.broadcast %180 : vector<8x1xf32> to vector<8x128xf32>
    %182 = arith.mulf %177, %181 : vector<8x128xf32>
    %183 = vector.broadcast %12 : vector<1x128xf32> to vector<8x128xf32>
    %184 = arith.mulf %182, %183 : vector<8x128xf32>
    %185 = vector.broadcast %13 : vector<1x128xf32> to vector<8x128xf32>
    %186 = arith.addf %184, %185 : vector<8x128xf32>
    %c0_57 = arith.constant 0 : index
    %c0_58 = arith.constant 0 : index
    %187 = vector.load %arg14[%c0_57, %c0_58] : memref<8x128xf32, #tpu.memory_space<vmem>>, vector<8x128xf32>
    tpu.vector_store %arg14[%c0_57, %c0_58], %186 {strides = array<i32>} : memref<8x128xf32, #tpu.memory_space<vmem>>, vector<8x128xf32>,
    %c1_i32 = arith.constant 1 : i32
    %188 = arith.cmpi eq, %arg0, %c1_i32 : i32
    %189 = arith.extui %188 : i1 to i32
    %c0_i32_59 = arith.constant 0 : i32
    %190 = arith.cmpi ne, %189, %c0_i32_59 : i32
    scf.if %190 {
      %191 = vector.extract_strided_slice %186 {offsets = [0, 0], sizes = [2, 128], strides = [1, 1]} : vector<8x128xf32> to vector<2x128xf32>
      %c0_60 = arith.constant 0 : index
      %c0_61 = arith.constant 0 : index
      %192 = vector.load %arg9[%c0_60, %c0_61] : memref<512x128xf32, #tpu.memory_space<vmem>>, vector<128x128xf32>
      %cst_62 = arith.constant dense<0.000000e+00> : vector<2x128xf32>
      %193 = tpu.matmul %191, %192, %cst_62 {dimension_numbers = #tpu.dot_dimension_numbers<[1], [0], [0], [1], [0, 0, 1, 1], [], []>} : vector<2x128xf32>, vector<128x128xf32>, vector<2x128xf32> -> vector<2x128xf32>
      %194 = vector.extract_strided_slice %186 {offsets = [2, 0], sizes = [2, 128], strides = [1, 1]} : vector<8x128xf32> to vector<2x128xf32>
      %c128 = arith.constant 128 : index
      %c0_63 = arith.constant 0 : index
      %195 = vector.load %arg9[%c128, %c0_63] : memref<512x128xf32, #tpu.memory_space<vmem>>, vector<128x128xf32>
      %cst_64 = arith.constant dense<0.000000e+00> : vector<2x128xf32>
      %196 = tpu.matmul %194, %195, %cst_64 {dimension_numbers = #tpu.dot_dimension_numbers<[1], [0], [0], [1], [0, 0, 1, 1], [], []>} : vector<2x128xf32>, vector<128x128xf32>, vector<2x128xf32> -> vector<2x128xf32>
      %197 = arith.addf %193, %196 : vector<2x128xf32>
      %198 = vector.extract_strided_slice %186 {offsets = [4, 0], sizes = [2, 128], strides = [1, 1]} : vector<8x128xf32> to vector<2x128xf32>
      %c256 = arith.constant 256 : index
      %c0_65 = arith.constant 0 : index
      %199 = vector.load %arg9[%c256, %c0_65] : memref<512x128xf32, #tpu.memory_space<vmem>>, vector<128x128xf32>
      %cst_66 = arith.constant dense<0.000000e+00> : vector<2x128xf32>
      %200 = tpu.matmul %198, %199, %cst_66 {dimension_numbers = #tpu.dot_dimension_numbers<[1], [0], [0], [1], [0, 0, 1, 1], [], []>} : vector<2x128xf32>, vector<128x128xf32>, vector<2x128xf32> -> vector<2x128xf32>
      %201 = arith.addf %197, %200 : vector<2x128xf32>
      %202 = vector.extract_strided_slice %186 {offsets = [6, 0], sizes = [2, 128], strides = [1, 1]} : vector<8x128xf32> to vector<2x128xf32>
      %c384 = arith.constant 384 : index
      %c0_67 = arith.constant 0 : index
      %203 = vector.load %arg9[%c384, %c0_67] : memref<512x128xf32, #tpu.memory_space<vmem>>, vector<128x128xf32>
      %cst_68 = arith.constant dense<0.000000e+00> : vector<2x128xf32>
      %204 = tpu.matmul %202, %203, %cst_68 {dimension_numbers = #tpu.dot_dimension_numbers<[1], [0], [0], [1], [0, 0, 1, 1], [], []>} : vector<2x128xf32>, vector<128x128xf32>, vector<2x128xf32> -> vector<2x128xf32>
      %205 = arith.addf %201, %204 : vector<2x128xf32>
      %c0_69 = arith.constant 0 : index
      %c0_70 = arith.constant 0 : index
      %206 = vector.load %arg10[%c0_69, %c0_70] : memref<1x128xf32, #tpu.memory_space<vmem>>, vector<1x128xf32>
      %207 = vector.broadcast %206 : vector<1x128xf32> to vector<2x128xf32>
      %208 = arith.addf %205, %207 : vector<2x128xf32>
      %c0_71 = arith.constant 0 : index
      %c0_72 = arith.constant 0 : index
      %209 = vector.load %arg11[%c0_71, %c0_72] : memref<1x128xf32, #tpu.memory_space<vmem>>, vector<1x128xf32>
      %c0_73 = arith.constant 0 : index
      %c0_74 = arith.constant 0 : index
      %210 = vector.load %arg12[%c0_73, %c0_74] : memref<1x128xf32, #tpu.memory_space<vmem>>, vector<1x128xf32>
      %cst_75 = arith.constant dense<0.000000e+00> : vector<2xf32>
      %211 = vector.multi_reduction <add>, %208, %cst_75 [1] : vector<2x128xf32> to vector<2xf32>
      %212 = vector.shape_cast %211 : vector<2xf32> to vector<2x1xf32>
      %cst_76 = arith.constant 1.280000e+02 : f32
      %213 = vector.broadcast %cst_76 : f32 to vector<2x1xf32>
      %214 = arith.divf %212, %213 : vector<2x1xf32>
      %215 = vector.broadcast %214 : vector<2x1xf32> to vector<2x128xf32>
      %216 = arith.subf %208, %215 : vector<2x128xf32>
      %217 = arith.mulf %216, %216 : vector<2x128xf32>
      %cst_77 = arith.constant dense<0.000000e+00> : vector<2xf32>
      %218 = vector.multi_reduction <add>, %217, %cst_77 [1] : vector<2x128xf32> to vector<2xf32>
      %219 = vector.shape_cast %218 : vector<2xf32> to vector<2x1xf32>
      %cst_78 = arith.constant 1.280000e+02 : f32
      %220 = vector.broadcast %cst_78 : f32 to vector<2x1xf32>
      %221 = arith.divf %219, %220 : vector<2x1xf32>
      %222 = vector.broadcast %214 : vector<2x1xf32> to vector<2x128xf32>
      %223 = arith.subf %208, %222 : vector<2x128xf32>
      %cst_79 = arith.constant 9.99999974E-6 : f32
      %224 = vector.broadcast %cst_79 : f32 to vector<2x1xf32>
      %225 = arith.addf %221, %224 : vector<2x1xf32>
      %226 = math.rsqrt %225 : vector<2x1xf32>
      %227 = vector.broadcast %226 : vector<2x1xf32> to vector<2x128xf32>
      %228 = arith.mulf %223, %227 : vector<2x128xf32>
      %229 = vector.broadcast %209 : vector<1x128xf32> to vector<2x128xf32>
      %230 = arith.mulf %228, %229 : vector<2x128xf32>
      %231 = vector.broadcast %210 : vector<1x128xf32> to vector<2x128xf32>
      %232 = arith.addf %230, %231 : vector<2x128xf32>
      %c0_80 = arith.constant 0 : index
      %c0_81 = arith.constant 0 : index
      %233 = vector.load %arg13[%c0_80, %c0_81] : memref<2x128xf32, #tpu.memory_space<vmem>>, vector<2x128xf32>
      tpu.vector_store %arg13[%c0_80, %c0_81], %232 {strides = array<i32>} : memref<2x128xf32, #tpu.memory_space<vmem>>, vector<2x128xf32>,
    } else {
    }
    return
  }
  func.func @transform_0(%arg0: i32) -> (i32, i32) {
    %c0_i32 = arith.constant 0 : i32
    %c0_i32_0 = arith.constant 0 : i32
    %c0_i32_1 = arith.constant 0 : i32
    return %c0_i32, %c0_i32_0 : i32, i32
  }
  func.func @transform_1(%arg0: i32) -> (i32, i32) {
    %c0_i32 = arith.constant 0 : i32
    %c0_i32_0 = arith.constant 0 : i32
    %c0_i32_1 = arith.constant 0 : i32
    return %c0_i32, %c0_i32_0 : i32, i32
  }
  func.func @transform_2(%arg0: i32) -> (i32, i32) {
    %c0_i32 = arith.constant 0 : i32
    %c0_i32_0 = arith.constant 0 : i32
    %c0_i32_1 = arith.constant 0 : i32
    return %c0_i32, %c0_i32_0 : i32, i32
  }
  func.func @transform_3(%arg0: i32) -> (i32, i32, i32) {
    %c0_i32 = arith.constant 0 : i32
    %c0_i32_0 = arith.constant 0 : i32
    %c0_i32_1 = arith.constant 0 : i32
    return %arg0, %c0_i32, %c0_i32_0 : i32, i32, i32
  }
  func.func @transform_4(%arg0: i32) -> (i32, i32, i32) {
    %c0_i32 = arith.constant 0 : i32
    %c0_i32_0 = arith.constant 0 : i32
    %c0_i32_1 = arith.constant 0 : i32
    return %arg0, %c0_i32, %c0_i32_0 : i32, i32, i32
  }
  func.func @transform_5(%arg0: i32) -> (i32, i32, i32) {
    %c0_i32 = arith.constant 0 : i32
    %c0_i32_0 = arith.constant 0 : i32
    %c0_i32_1 = arith.constant 0 : i32
    return %arg0, %c0_i32, %c0_i32_0 : i32, i32, i32
  }
  func.func @transform_6(%arg0: i32) -> (i32, i32, i32) {
    %c0_i32 = arith.constant 0 : i32
    %c0_i32_0 = arith.constant 0 : i32
    %c0_i32_1 = arith.constant 0 : i32
    return %arg0, %c0_i32, %c0_i32_0 : i32, i32, i32
  }
  func.func @transform_7(%arg0: i32) -> (i32, i32, i32) {
    %c0_i32 = arith.constant 0 : i32
    %c0_i32_0 = arith.constant 0 : i32
    %c0_i32_1 = arith.constant 0 : i32
    return %arg0, %c0_i32, %c0_i32_0 : i32, i32, i32
  }
  func.func @transform_8(%arg0: i32) -> (i32, i32) {
    %c0_i32 = arith.constant 0 : i32
    %c0_i32_0 = arith.constant 0 : i32
    %c0_i32_1 = arith.constant 0 : i32
    return %c0_i32, %c0_i32_0 : i32, i32
  }
  func.func @transform_9(%arg0: i32) -> (i32, i32) {
    %c0_i32 = arith.constant 0 : i32
    %c0_i32_0 = arith.constant 0 : i32
    %c0_i32_1 = arith.constant 0 : i32
    return %c0_i32, %c0_i32_0 : i32, i32
  }
  func.func @transform_10(%arg0: i32) -> (i32, i32) {
    %c0_i32 = arith.constant 0 : i32
    %c0_i32_0 = arith.constant 0 : i32
    %c0_i32_1 = arith.constant 0 : i32
    return %c0_i32, %c0_i32_0 : i32, i32
  }
  func.func @transform_11(%arg0: i32) -> (i32, i32) {
    %c0_i32 = arith.constant 0 : i32
    %c0_i32_0 = arith.constant 0 : i32
    %c0_i32_1 = arith.constant 0 : i32
    return %c0_i32, %c0_i32_0 : i32, i32
  }
  func.func @transform_12(%arg0: i32) -> (i32, i32) {
    %c0_i32 = arith.constant 0 : i32
    %c0_i32_0 = arith.constant 0 : i32
    %c0_i32_1 = arith.constant 0 : i32
    return %c0_i32, %c0_i32_0 : i32, i32
  }
}

</mosaic_0001>

<bundles_post_ra>
// kernel: tpu_custom_call.1
= control target key start
LH: loop header
LB: loop body
LE: loop exit
PB: predicated region body
PF: predicated region fallthrough
CT: control target
= control target key end

     0   :  { %s4563_s0 = inlined_call_operand.vmem [shape: f32[8,128], index: 0, kind: input, shape index: {}]   ;;  %s4564_s1 = inlined_call_operand.vmem [shape: f32[8,1], index: 1, kind: input, shape index: {}]   ;;  %s4565_s2 = inlined_call_operand.vmem [shape: f32[1,8], index: 2, kind: input, shape index: {}]   ;;  %s4566_s3 = inlined_call_operand.hbm [shape: bf16[2,128,384], index: 3, kind: input, shape index: {}]   ;;  %s4567_s4 = inlined_call_operand.hbm [shape: bf16[2,128,128], index: 4, kind: input, shape index: {}]   ;;  %s4568_s5 = inlined_call_operand.hbm [shape: bf16[2,128,512], index: 5, kind: input, shape index: {}]   ;;  %s4569_s6 = inlined_call_operand.hbm [shape: bf16[2,512,128], index: 6, kind: input, shape index: {}]   ;;  %s4570_s7 = inlined_call_operand.hbm [shape: f32[2,8,512], index: 7, kind: input, shape index: {}]   ;;  %s4571_s8 = inlined_call_operand.hbm [shape: f32[512,128], index: 8, kind: input, shape index: {}]   ;;  %s4572_s9 = inlined_call_operand.vmem [shape: f32[1,128], index: 9, kind: input, shape index: {}]   ;;  %s4573_s10 = inlined_call_operand.vmem [shape: f32[1,128], index: 10, kind: input, shape index: {}]   ;;  %s4574_s11 = inlined_call_operand.vmem [shape: f32[1,128], index: 11, kind: input, shape index: {}]   ;;  %s4575_s12 = inlined_call_operand.hbm [shape: f32[2,128], index: 12, kind: output, shape index: {}]  }
   0x1   :  { %4585 = sst [smem:[#allocation23_spill]] %s4563_s0 }
   0x2   :  { %4586 = sst [smem:[#allocation24_spill]] %s4564_s1 }
   0x3   :  { %4587 = sst [smem:[#allocation25_spill]] %s4565_s2 }
   0x4   :  { %4588 = sst [smem:[#allocation26_spill]] %s4567_s4 }
   0x5   :  { %4589 = sst [smem:[#allocation27_spill]] %s4569_s6 }
   0x6   :  { %4590 = sst [smem:[#allocation28_spill]] %s4572_s9 }
   0x7   :  { %4591 = sst [smem:[#allocation29_spill]] %s4573_s10 }
   0x8   :  { %4592 = sst [smem:[#allocation30_spill]] %s4574_s11 }
   0x9   :  { %4593 = sst [smem:[#allocation31_spill]] %s4575_s12 }
   0xa   :  { %17 = vsyncpa [#allocation4], 0 }
   0xb   :  { %19 = vsyncpa [#allocation4 + $0x1], 0 }
   0xc   :  { %20 = vsyncpa [#allocation7], 0 }
   0xd   :  { %22 = vsyncpa [#allocation7 + $0x1], 0 }
   0xe   :  { %23 = vsyncpa [#allocation10], 0 }
   0xf   :  { %25 = vsyncpa [#allocation10 + $0x1], 0 }
  0x10   :  { %26 = vsyncpa [#allocation13], 0 }
  0x11   :  { %27 = vsyncpa [#allocation5], 0  ;;  %s3926_s21 = smov 0   ;;  %s3928_s22 = smov 0  }
  0x12   :  { %s3930_s23 = smov 0   ;;  %s3932_s24 = smov 0  }
  0x13 LB: > { %4594 = sst [smem:[#allocation20_spill]] %s3831_s23  ;;  %s3947_s25 = sadd.s32 1, %s3835_s24   ;;  %s3835_s24 = sphi %s3932_s24, %s4619_s24   ;;  %s3831_s23 = sphi %s3930_s23, %s4621_s23   ;;  %s3827_s22 = sphi %s3928_s22, %s4623_s22   ;;  %s3823_s21 = sphi %s3926_s21, %s4622_s21  }
  0x14   : > { %4595 = sst [smem:[#allocation21_spill]] %s3947_s25  ;;  %s103_s26 = sadd.s32 1, %s3831_s23 }
  0x15   : > { %s100_s27 = ssub.s32 %s3835_s24, %s3947_s25  ;;  %p110_p0 = scmp.ne.s32.totalorder %s3831_s23, %s3827_s22 }
  0x16   : > { %p101_p1 = scmp.eq.s32.totalorder %s100_s27, 0  ;;  %p111_p2 = scmp.eq.s32.totalorder %s3835_s24, 0 }
  0x17   : > { %p3375_p3 = scmp.lt.s32.totalorder %s3835_s24, 2  ;;  %s3960_s29 = sand.u32 1, %s3831_s23  }
  0x18   : > { %s3957_s28 = scalar_select %p101_p1, %s3831_s23, %s103_s26  }
  0x19   : > { %p112_p4 = por %p111_p2, %p110_p0  ;;  %s4576_s30 = sand.u32 1, %s3835_s24  }
  0x1a   : > { %4596 = sst [smem:[#allocation22_spill]] %s3957_s28  ;;  %s2811_s13 = sshll.u32 %s3960_s29, 6 }
  0x1b   : > { %p3964_p5 = pnand %p3375_p3, %p112_p4  ;;  %s2943_s15 = sshll.u32 %s3835_s24, 10 }
  0x1c   : > { %s4598_s4 = sld [smem:[#allocation26_spill]]  ;;  %s405_s19 = scalar_lea.vmem [#allocation6], %s2811_s13 }
  0x1d   : > { %s412_s20 = sshll.u32 %s405_s19, 4  ;;  %s3978_s26 = scalar_lea.sflag [#allocation7], %s4576_s30  ;;  %s3974_s20 = int_to_ptr.vmem [resolvable:$true] %s412_s20 }
  0x1e   : > { %p3984_p7 = pneg %p3964_p5 }
  0x22   : > { %s3972_s18 = scalar_lea.hbm %s4598_s4, %s2943_s15  ;;  %s3600_s13 = scalar_lea.hbm %s4598_s4, 2048 }
  0x23   : > { %s3595_s27 = scalar_lea.hbm %s3972_s18, 1024  ;;  %p3601_p10 = scmp.lt.s32.totalorder %s3972_s18, %s4598_s4 }
  0x24   : > { %p3596_p6 = scmp.ne.s32.totalorder %s3972_s18, %s3595_s27  ;;  %p3602_p11 = scmp.lt.s32.totalorder %s3600_s13, %s3595_s27 }
  0x26   : > { %p3598_p8 = pnand %p3984_p7, %p3596_p6  ;;  %p3603_p12 = por %p3602_p11, %p3601_p10 }
  0x28   : > { %p3599_p9 = pneg %p3598_p8 }
  0x2a   : > { %p3604_p13 = pnand %p3603_p12, %p3599_p9 }
  0x2c   : > { %3607 = shalt.err (!%p3604_p13)
}
  0x2d   : > { %s3608_s30 = scalar_lea.vmem %s3974_s20, 1024  ;;  %s3837_s23 = smov [#allocation6]  }
  0x2e   : > { %p3609_p0 = scmp.ne.s32.totalorder %s3974_s20, %s3608_s30  ;;  %s3613_s15 = sshll.u32 %s3837_s23, 4  ;;  %s3614_s15 = int_to_ptr.vmem [resolvable:$false] %s3613_s15 }
  0x2f   : > { %s3615_s16 = scalar_lea.vmem %s3614_s15, 2048  ;;  %p3616_p3 = scmp.lt.s32.totalorder %s3974_s20, %s3614_s15 }
  0x30   : > { %p3611_p1 = pnand %p3609_p0, %p3984_p7  ;;  %p3617_p4 = scmp.lt.s32.totalorder %s3615_s16, %s3608_s30 }
  0x32   : > { %p3612_p2 = pneg %p3611_p1  ;;  %p3618_p6 = por %p3617_p4, %p3616_p3 }
  0x34   : > { %p3619_p8 = pnand %p3618_p6, %p3612_p2 }
  0x36   : > { %3622 = shalt.err (!%p3619_p8)
}
  0x37   : > { %s4580_s27 = smov 64   ;;  %s4581_s13 = smov 4  }
  0x38   : > { %3364 = dma.hbm_to_vmem [thread:$0]  (!%p3964_p5), %s3972_s18, 1024, %s3974_s20, %s3978_s26, %s4580_s27, %s4580_s27, %s4581_s13  }
  0x39   : > { %s2814_s23 = sshll.u32 %s3960_s29, 8  ;;  %s2944_s30 = sshll.u32 %s3835_s24, 12 }
  0x3a   : > { %s4015_s15 = scalar_lea.hbm %s4568_s5, %s2944_s30  ;;  %s426_s16 = scalar_lea.vmem [#allocation8], %s2814_s23 }
  0x3b   : > { %s433_s4 = sshll.u32 %s426_s16, 4  ;;  %s4600_s6 = sld [smem:[#allocation27_spill]]  ;;  %s4017_s4 = int_to_ptr.vmem [resolvable:$true] %s433_s4 }
  0x3c   : > { %s447_s18 = scalar_lea.vmem [#allocation9], %s2814_s23  ;;  %s4601_s27 = sand.u32 1, %s3835_s24  }
  0x3d   : > { %s454_s20 = sshll.u32 %s447_s18, 4  ;;  %s4028_s17 = scalar_lea.sflag [#allocation10], %s4601_s27  ;;  %s4024_s20 = int_to_ptr.vmem [resolvable:$true] %s454_s20 }
  0x41   : > { %s4022_s11 = scalar_lea.hbm %s4600_s6, %s2944_s30  ;;  %s3628_s12 = scalar_lea.hbm %s4600_s6, 8192 }
  0x42   : > { %s3623_s19 = scalar_lea.hbm %s4022_s11, 4096  ;;  %p3629_p12 = scmp.lt.s32.totalorder %s4022_s11, %s4600_s6 }
  0x43   : > { %p3624_p9 = scmp.ne.s32.totalorder %s4022_s11, %s3623_s19  ;;  %p3630_p13 = scmp.lt.s32.totalorder %s3628_s12, %s3623_s19 }
  0x45   : > { %p3626_p10 = pnand %p3624_p9, %p3984_p7  ;;  %p3631_p0 = por %p3630_p13, %p3629_p12 }
  0x47   : > { %p3627_p11 = pneg %p3626_p10 }
  0x49   : > { %p3632_p1 = pnand %p3631_p0, %p3627_p11 }
  0x4b   : > { %3635 = shalt.err (!%p3632_p1)
}
  0x4c   : > { %s3636_s27 = scalar_lea.vmem %s4024_s20, 4096  ;;  %s3840_s23 = smov [#allocation9]  }
  0x4d   : > { %p3637_p2 = scmp.ne.s32.totalorder %s4024_s20, %s3636_s27  ;;  %s3641_s13 = sshll.u32 %s3840_s23, 4  ;;  %s3642_s13 = int_to_ptr.vmem [resolvable:$false] %s3641_s13 }
  0x4e   : > { %s3643_s18 = scalar_lea.vmem %s3642_s13, 8192  ;;  %p3644_p6 = scmp.lt.s32.totalorder %s4024_s20, %s3642_s13 }
  0x4f   : > { %p3639_p3 = pnand %p3637_p2, %p3984_p7  ;;  %p3645_p8 = scmp.lt.s32.totalorder %s3643_s18, %s3636_s27 }
  0x51   : > { %p3640_p4 = pneg %p3639_p3  ;;  %p3646_p9 = por %p3645_p8, %p3644_p6 }
  0x53   : > { %p3647_p10 = pnand %p3646_p9, %p3640_p4 }
  0x55   : > { %3650 = shalt.err (!%p3647_p10)
}
  0x56   : > { %s4602_s19 = smov 4   ;;  %s4603_s16 = smov 64  }
  0x57   : > { %3370 = dma.hbm_to_vmem [thread:$0]  (!%p3964_p5), %s4022_s11, 4096, %s4024_s20, %s4028_s17, %s4603_s16, %s4603_s16, %s4602_s19  }
  0x58   : > { %s4055_s12 = sadd.s32 4294967295, %s3835_s24   ;;  %p116_p11 = scmp.ne.s32.totalorder %s3827_s22, %s3823_s21 }
  0x59   : > { %p4583_p12 = scmp.eq.s32.totalorder %s4055_s12, 0  ;;  %p2807_p13 = scmp.ge.s32.totalorder %s3835_s24, 1 }
  0x5a   : > { %p336_p0 = scmp.lt.s32.totalorder %s3835_s24, 3  ;;  %s3841_s11 = smov [#allocation12]  }
  0x5b   : > { %p4064_p1 = por %p4583_p12, %p116_p11  ;;  %s357_s20 = sshll.u32 %s3841_s11, 4  ;;  %s358_s20 = int_to_ptr.vmem [resolvable:$true] %s357_s20 }
  0x5c   : > { %p4069_p3 = pnand %p2807_p13, %p336_p0  ;;  %s3333_s27 = smul.u32 192, %s3960_s29 }
  0x5d   : > { %s4604_s25 = scalar_select %p4064_p1, 1, 0 }
  0x5e   : > { %s4605_s30 = scalar_select %p4069_p3, 1, 0 }
  0x5f   : > { %p3354_p4 = pneg %p4069_p3  ;;  %s3334_s23 = smul.u32 3072, %s3835_s24 }
  0x60   : > { %s3662_s13 = scalar_lea.vmem %s358_s20, 8192  ;;  %p3670_p13 = scmp.lt.s32.totalorder %s358_s20, %s358_s20 }
  0x61   : > { %p4077_p6 = pnand %p3354_p4, %p4583_p12  ;;  %p3663_p9 = scmp.ne.s32.totalorder %s358_s20, %s3662_s13 }
  0x62   : > { %p3671_p0 = scmp.lt.s32.totalorder %s3662_s13, %s3662_s13 }
  0x63   : > { %p3653_p8 = pneg %p4077_p6 }
  0x64   : > { %p3672_p2 = por %p3671_p0, %p3670_p13 }
  0x65   : > { %p3665_p10 = pnand %p3663_p9, %p3653_p8 }
  0x67   : > { %p3666_p11 = pneg %p3665_p10 }
  0x69   : > { %p3673_p1 = pnand %p3672_p2, %p3666_p11 }
  0x6b   : > { %3676 = shalt.err (!%p3673_p1)
}
  0x6c   : > { %s3842_s18 = smov 128   ;;  %s3843_s19 = smov 8  }
  0x6d   : > { %3357 = dma.hbm_to_vmem [thread:$0]  (!%p4077_p6), %s4571_s8, 8192, %s358_s20, [#allocation13], %s3842_s18, %s3842_s18, %s3843_s19  }
  0x6e   : > { %s4093_s9 = scalar_lea.hbm %s4566_s3, %s3334_s23  ;;  %s384_s13 = scalar_lea.vmem [#allocation3], %s3333_s27 }
  0x6f   : > { %s391_s2 = sshll.u32 %s384_s13, 4  ;;  %s381_s1 = scalar_lea.sflag [#allocation4], %s3960_s29  ;;  %s4095_s2 = int_to_ptr.vmem [resolvable:$true] %s391_s2 }
  0x70   : > { %s3677_s0 = scalar_lea.hbm %s4093_s9, 3072  ;;  %s3682_s18 = scalar_lea.hbm %s4566_s3, 6144 }
  0x71   : > { %p3678_p1 = scmp.ne.s32.totalorder %s4093_s9, %s3677_s0  ;;  %p3683_p6 = scmp.lt.s32.totalorder %s4093_s9, %s4566_s3 }
  0x72   : > { %p3684_p8 = scmp.lt.s32.totalorder %s3682_s18, %s3677_s0 }
  0x73   : > { %p3680_p2 = pnand %p3678_p1, %p3984_p7 }
  0x74   : > { %p3685_p9 = por %p3684_p8, %p3683_p6 }
  0x75   : > { %p3681_p4 = pneg %p3680_p2 }
  0x77   : > { %p3686_p10 = pnand %p3685_p9, %p3681_p4 }
  0x79   : > { %3689 = shalt.err (!%p3686_p10)
}
  0x7a   : > { %s3690_s27 = scalar_lea.vmem %s4095_s2, 3072  ;;  %s3844_s23 = smov [#allocation3]  }
  0x7b   : > { %p3691_p11 = scmp.ne.s32.totalorder %s4095_s2, %s3690_s27  ;;  %s3695_s19 = sshll.u32 %s3844_s23, 4  ;;  %s3696_s19 = int_to_ptr.vmem [resolvable:$false] %s3695_s19 }
  0x7c   : > { %s3697_s16 = scalar_lea.vmem %s3696_s19, 6144  ;;  %p3698_p1 = scmp.lt.s32.totalorder %s4095_s2, %s3696_s19 }
  0x7d   : > { %p3693_p13 = pnand %p3691_p11, %p3984_p7  ;;  %p3699_p2 = scmp.lt.s32.totalorder %s3697_s16, %s3690_s27 }
  0x7f   : > { %p3694_p0 = pneg %p3693_p13  ;;  %p3700_p12 = por %p3699_p2, %p3698_p1 }
  0x81   : > { %p3701_p3 = pnand %p3700_p12, %p3694_p0 }
  0x83   : > { %3704 = shalt.err (!%p3701_p3)
}
  0x84   : > { %s3845_s0 = smov 192   ;;  %s3846_s11 = smov 12  }
  0x85   : > { %3361 = dma.hbm_to_vmem [thread:$0]  (!%p3964_p5), %s4093_s9, 3072, %s4095_s2, %s381_s1, %s3845_s0, %s3845_s0, %s3846_s11  }
  0x86   : > { %s3705_s13 = scalar_lea.hbm %s4015_s15, 4096  ;;  %s3710_s18 = scalar_lea.hbm %s4568_s5, 8192 }
  0x87   : > { %p3706_p4 = scmp.ne.s32.totalorder %s4015_s15, %s3705_s13  ;;  %p3711_p12 = scmp.lt.s32.totalorder %s4015_s15, %s4568_s5 }
  0x88   : > { %p3712_p3 = scmp.lt.s32.totalorder %s3710_s18, %s3705_s13 }
  0x89   : > { %p3708_p6 = pnand %p3706_p4, %p3984_p7 }
  0x8a   : > { %p3713_p9 = por %p3712_p3, %p3711_p12 }
  0x8b   : > { %p3709_p8 = pneg %p3708_p6 }
  0x8d   : > { %p3714_p10 = pnand %p3713_p9, %p3709_p8 }
  0x8f   : > { %3717 = shalt.err (!%p3714_p10)
}
  0x90   : > { %s3718_s1 = scalar_lea.vmem %s4017_s4, 4096  ;;  %s3847_s2 = smov [#allocation8]  }
  0x91   : > { %p3719_p11 = scmp.ne.s32.totalorder %s4017_s4, %s3718_s1  ;;  %s3723_s9 = sshll.u32 %s3847_s2, 4  ;;  %s3724_s9 = int_to_ptr.vmem [resolvable:$false] %s3723_s9 }
  0x92   : > { %s3725_s27 = scalar_lea.vmem %s3724_s9, 8192  ;;  %p3726_p1 = scmp.lt.s32.totalorder %s4017_s4, %s3724_s9 }
  0x93   : > { %p3721_p13 = pnand %p3719_p11, %p3984_p7  ;;  %p3727_p2 = scmp.lt.s32.totalorder %s3725_s27, %s3718_s1 }
  0x95   : > { %p3722_p0 = pneg %p3721_p13  ;;  %p3728_p4 = por %p3727_p2, %p3726_p1 }
  0x97   : > { %p3729_p6 = pnand %p3728_p4, %p3722_p0 }
  0x99   : > { %3732 = shalt.err (!%p3729_p6)
}
  0x9a   : > { %s3848_s23 = smov 256   ;;  %s3849_s19 = smov 16  }
  0x9b   : > { %3367 = dma.hbm_to_vmem [thread:$0]  (!%p3964_p5), %s4015_s15, 4096, %s4017_s4, %s3978_s26, %s3848_s23, %s3848_s23, %s3849_s19  }
  0x9c   : > { %s2820_s16 = sshll.u32 %s3960_s29, 5  ;;  %s2946_s0 = sshll.u32 %s3835_s24, 9 }
  0x9d   : > { %s474_s21 = scalar_lea.hbm %s4570_s7, %s2946_s0  ;;  %s468_s20 = scalar_lea.vmem [#allocation11], %s2820_s16 }
  0x9e   : > { %s476_s18 = sshll.u32 %s468_s20, 4  ;;  %s3733_s6 = scalar_lea.hbm %s474_s21, 512  ;;  %s477_s18 = int_to_ptr.vmem [resolvable:$true] %s476_s18 }
  0x9f   : > { %p3734_p8 = scmp.ne.s32.totalorder %s474_s21, %s3733_s6  ;;  %s3738_s2 = scalar_lea.hbm %s4570_s7, 1024 }
  0xa0   : > { %p3739_p9 = scmp.lt.s32.totalorder %s474_s21, %s4570_s7  ;;  %p3740_p10 = scmp.lt.s32.totalorder %s3738_s2, %s3733_s6 }
  0xa1   : > { %p3736_p12 = pnand %p3734_p8, %p3984_p7 }
  0xa2   : > { %p3741_p11 = por %p3740_p10, %p3739_p9 }
  0xa3   : > { %p3737_p3 = pneg %p3736_p12 }
  0xa5   : > { %p3742_p13 = pnand %p3741_p11, %p3737_p3 }
  0xa7   : > { %3745 = shalt.err (!%p3742_p13)
}
  0xa8   : > { %s3746_s24 = scalar_lea.vmem %s477_s18, 512  ;;  %s3850_s29 = smov [#allocation11]  }
  0xa9   : > { %p3747_p0 = scmp.ne.s32.totalorder %s477_s18, %s3746_s24  ;;  %s3751_s26 = sshll.u32 %s3850_s29, 4  ;;  %s3752_s26 = int_to_ptr.vmem [resolvable:$false] %s3751_s26 }
  0xaa   : > { %s3753_s15 = scalar_lea.vmem %s3752_s26, 1024  ;;  %p3754_p4 = scmp.lt.s32.totalorder %s477_s18, %s3752_s26 }
  0xab   : > { %p3749_p1 = pnand %p3747_p0, %p3984_p7  ;;  %p3755_p6 = scmp.lt.s32.totalorder %s3753_s15, %s3746_s24 }
  0xad   : > { %p3750_p2 = pneg %p3749_p1  ;;  %p3756_p8 = por %p3755_p6, %p3754_p4 }
  0xaf   : > { %p3757_p12 = pnand %p3756_p8, %p3750_p2 }
  0xb1   : > { %3760 = shalt.err (!%p3757_p12)
}
  0xb2   : > { %3373 = dma.hbm_to_vmem [thread:$0]  (!%p3964_p5), %s474_s21, 512, %s477_s18, %s4028_s17  }
  0xb3   : > { %p4607_p3 = scmp.ne.s32.totalorder %s4605_s30, 0 }
  0xb4   : > { %s487_s28 = sand.u32 (!%p4607_p3), 1, %s3827_s22   ;;  %p4608_p7 = scmp.ne.s32.totalorder (!%p4607_p3), %s4604_s25, 0 }
  0xb5   : > { %485 = sbr.rel (%p4607_p3) target bundleno = 3796 (0xed4), region = 68  ;;  %s488_s23 = scalar_lea.sflag (!%p4607_p3), [#allocation4], %s487_s28 }
  0xb6   : > { %s3335_s27 = smul.u32 (!%p4607_p3), 192, %s487_s28 }
  0xb8   : > { %s4162_s19 = scalar_lea.vmem (!%p4607_p3), [#allocation3], %s3335_s27 }
  0xba   : > { %3802 = dma.done.wait (%p4608_p7), %s488_s23, 3072  }
  0xbb   : > { %3804 = vsyncadd (%p4608_p7), %s488_s23, 4294964224  ;;  %s496_s14 = sand.u32 1, %s4055_s12   ;;  %s2824_s16 = sshll.u32 %s487_s28, 6 }
  0xbc   : > { %s497_s17 = scalar_lea.sflag [#allocation7], %s496_s14  ;;  %s4169_s0 = scalar_lea.vmem [#allocation6], %s2824_s16 }
  0xbd   : > { %3806 = dma.done.wait (%p4608_p7), %s497_s17, 5120  }
  0xbe   : > { %3808 = vsyncadd (%p4608_p7), %s497_s17, 4294962176  ;;  %s2825_s30 = sshll.u32 %s487_s28, 8  ;;  %s515_s13 = scalar_lea.sflag [#allocation10], %s496_s14 }
  0xbf   : > { %s4175_s11 = scalar_lea.vmem [#allocation8], %s2825_s30  ;;  %s4177_s21 = scalar_lea.vmem [#allocation9], %s2825_s30 }
  0xc0   : > { %3810 = dma.done.wait (%p4608_p7), %s515_s13, 4608  }
  0xc1   : > { %3812 = vsyncadd (%p4608_p7), %s515_s13, 4294962688  ;;  %s2827_s20 = sshll.u32 %s487_s28, 5  ;;  %p4609_p5 = scmp.eq.s32.totalorder %s4055_s12, 0 }
  0xc2   : > { %s4183_s18 = scalar_lea.vmem [#allocation11], %s2827_s20 }
  0xc3   : > { %3814 = dma.done.wait (%p4609_p5), [#allocation13], 8192   ;;  %p4610_p9 = pmov %p4609_p5 }
  0xc4   : > { %p4611_p10 = scmp.ne.s32.totalorder %s4055_s12, 0 }
  0xc5   : > { %3816 = vsyncadd (%p4610_p9), [#allocation13], 4294959104  ;;  %s4612_s1 = sld [smem:[#allocation23_spill]] (!%p4611_p10) }
  0xc6   : > { %591 = sbr.rel (%p4611_p10) target bundleno = 205 (0xcd), region = 96 }
  0xcb   : > { %v592_v0 = vld [vmem:[%s4612_s1] sm:$0xff] }
  0xcc   : > { %593 = vst [vmem:[#allocation2] sm:$0xff] %v592_v0 }
  0xcd PF: > { %v3453_v1 = vld [vmem:[%s4162_s19 + $0xac] ss:$12 sps:$4 sm:$0xff]   ;;  %v3455_v2 = vld [vmem:[%s4162_s19 + $0xa8] ss:$12 sps:$4 sm:$0xff]   ;;  %v3851_v3 = vmov 0   ;;  %v3852_v21 = vmov 0.0   ;;  %v647_v27 = vlaneseq }
  0xce   : > { %819 = vmatprep.mubr.bf16.mxu0 %v3851_v3  ;;  %787 = vmatprep.subr.bf16.mxu0 %v3453_v1  ;;  %v3456_v4 = vld [vmem:[%s4162_s19 + $0x94] ss:$12 sps:$4 sm:$0xff]   ;;  %v3458_v5 = vld [vmem:[%s4162_s19 + $0x90] ss:$12 sps:$4 sm:$0xff]   ;;  %v3461_v7 = vld [vmem:[%s4162_s19 + $0x78] ss:$12 sps:$4 sm:$0xff]  }
  0xcf   : > { %788 = vmatpush1.bf16.msra.mxu0 %v3455_v2  ;;  %v3459_v6 = vld [vmem:[%s4162_s19 + $0x7c] ss:$12 sps:$4 sm:$0xff]   ;;  %v3462_v8 = vld [vmem:[%s4162_s19 + $0x64] ss:$12 sps:$4 sm:$0xff]   ;;  %v3464_v9 = vld [vmem:[%s4162_s19 + $0x60] ss:$12 sps:$4 sm:$0xff]   ;;  %3097 = vmatprep.subr.bf16.mxu1 %v3852_v21 }
  0xd0   : > { %789 = vmatprep.subr.bf16.mxu0 %v3456_v4  ;;  %v3465_v10 = vld [vmem:[%s4162_s19 + $0x4c] ss:$12 sps:$4 sm:$0xff]   ;;  %v3467_v11 = vld [vmem:[%s4162_s19 + $0x48] ss:$12 sps:$4 sm:$0xff]   ;;  %v3470_v13 = vld [vmem:[%s4162_s19 + $0x30] ss:$12 sps:$4 sm:$0xff]  }
  0xd1   : > { %v3468_v12 = vld [vmem:[%s4162_s19 + $0x34] ss:$12 sps:$4 sm:$0xff]   ;;  %v3471_v14 = vld [vmem:[%s4162_s19 + $0x1c] ss:$12 sps:$4 sm:$0xff]   ;;  %v3473_v15 = vld [vmem:[%s4162_s19 + $0x18] ss:$12 sps:$4 sm:$0xff]  }
  0xd2   : > { %v3474_v16 = vld [vmem:[%s4162_s19 + $0x4] ss:$12 sps:$4 sm:$0xff]   ;;  %v3476_v17 = vld [vmem:[%s4162_s19] ss:$12 sps:$4 sm:$0xff]   ;;  %v3480_v24 = vld [vmem:[%s4162_s19 + $0x68] ss:$12 sps:$4 sm:$0xff]  }
  0xd3   : > { %790 = vmatpush1.bf16.msra.mxu0 %v3458_v5  ;;  %v4211_v18 = vld [vmem:[#allocation2] sm:$0xff]  ;;  %v3479_v23 = vld [vmem:[%s4162_s19 + $0x80] ss:$12 sps:$4 sm:$0xff]   ;;  %v4229_v28 = vshrl.u32 %v647_v27, 7  ;;  %v3484_v37 = vld [vmem:[%s4162_s19 + $0x8] ss:$12 sps:$4 sm:$0xff]  }
  0xd4   : > { %791 = vmatprep.subr.bf16.mxu0 %v3459_v6  ;;  %v614_v19 = vpack.c.bf16 %v4211_v18, %v4211_v18  ;;  %v3477_v20 = vld [vmem:[%s4162_s19 + $0xb0] ss:$12 sps:$4 sm:$0xff]   ;;  %v3478_v22 = vld [vmem:[%s4162_s19 + $0x98] ss:$12 sps:$4 sm:$0xff]   ;;  %v4232_v29 = vld [vmem:[%s4183_s18 + $0x8] sm:$0xff]  ;;  %vm3853_vm0 = vmmov 0  }
  0xd5   : > { %3098 = vmatpush3.bf16.msra.mxu1 %v3477_v20  ;;  %v3481_v25 = vld [vmem:[%s4162_s19 + $0x50] ss:$12 sps:$4 sm:$0xff]   ;;  %v3482_v26 = vld [vmem:[%s4162_s19 + $0x38] ss:$12 sps:$4 sm:$0xff]   ;;  %v649_v30 = vsub.s32 0, %v4229_v28  ;;  %3113 = vmatprep.mubr.msk.bf16.mxu1 %vm3853_vm0, %v3852_v21  ;;  %s4613_s9 = sld [smem:[#allocation24_spill]] }
  0xd6   : > { %3099 = vmatprep.subr.bf16.mxu1 %v3852_v21  ;;  %v3483_v33 = vld [vmem:[%s4162_s19 + $0x20] ss:$12 sps:$4 sm:$0xff]   ;;  %s3854_s4 = smov 32   ;;  %s3855_s24 = smov 96   ;;  %vm903_vm1 = vcmask 261120   ;;  %v4266_v50 = vld [vmem:[%s4183_s18 + $0x10] sm:$0xff] }
  0xd7   : > { %792 = vmatpush1.bf16.msra.mxu0 %v3461_v7  ;;  %v654_v31 = vrot.slane %v4232_v29, %v649_v30  ;;  %v4251_v39 = vld [vmem:[%s4183_s18] sm:$0xff]  ;;  %v658_v51 = vrot.slane %v4266_v50, %v649_v30  ;;  %vm966_vm2 = vcmask 1043456   ;;  %s4614_s15 = sld [smem:[#allocation25_spill]]  ;;  %v3856_v61 = vmov -1e+09   ;;  %s3857_s28 = smov 64  }
  0xd8   : > { %793 = vmatprep.subr.bf16.mxu0 %v3462_v8  ;;  %v650_v41 = vrot.slane %v4251_v39, %v649_v30  ;;  %vm949_vm4 = vcmask 64512   ;;  %vm1458_vm5 = vcmask 523264   ;;  %vm1460_vm6 = vcmask 785408   ;;  %p2935_p11 = scmp.ne.s32.totalorder %s4055_s12, 1 }
  0xd9   : > { %3100 = vmatpush3.bf16.msra.mxu1 %v3478_v22  ;;  %s4615_s19 = sld [smem:[#allocation28_spill]] (!%p2935_p11) }
  0xda   : > { %3101 = vmatprep.subr.bf16.mxu1 %v3852_v21  ;;  %s4616_s17 = sld [smem:[#allocation29_spill]] (!%p2935_p11) }
  0xdb   : > { %794 = vmatpush1.bf16.msra.mxu0 %v3464_v9  ;;  %v599_v40 = vld [vmem:[%s4613_s9] sm:$0xff] }
  0xdc   : > { %795 = vmatprep.subr.bf16.mxu0 %v3465_v10 }
  0xdd   : > { %3102 = vmatpush3.bf16.msra.mxu1 %v3479_v23  ;;  %v2830_v59 = vld [vmem:[%s4614_s15] ss:$0 sm:$0xff] }
  0xde   : > { %3103 = vmatprep.subr.bf16.mxu1 %v3852_v21 }
  0xdf   : > { %796 = vmatpush1.bf16.msra.mxu0 %v3467_v11 }
  0xe0   : > { %797 = vmatprep.subr.bf16.mxu0 %v3468_v12 }
  0xe1   : > { %3104 = vmatpush3.bf16.msra.mxu1 %v3480_v24 }
  0xe2   : > { %3105 = vmatprep.subr.bf16.mxu1 %v3852_v21 }
  0xe3   : > { %798 = vmatpush1.bf16.msra.mxu0 %v3470_v13 }
  0xe4   : > { %799 = vmatprep.subr.bf16.mxu0 %v3471_v14 }
  0xe5   : > { %3106 = vmatpush3.bf16.msra.mxu1 %v3481_v25 }
  0xe6   : > { %3107 = vmatprep.subr.bf16.mxu1 %v3852_v21 }
  0xe7   : > { %800 = vmatpush1.bf16.msra.mxu0 %v3473_v15 }
  0xe8   : > { %801 = vmatprep.subr.bf16.mxu0 %v3474_v16 }
  0xe9   : > { %3108 = vmatpush3.bf16.msra.mxu1 %v3482_v26 }
  0xea   : > { %3109 = vmatprep.subr.bf16.mxu1 %v3852_v21 }
  0xeb   : > { %802 = vmatpush1.bf16.msra.mxu0 %v3476_v17 }
  0xec   : > { %3145 = vmatprep.subr.bf16.mxu0 %v3852_v21 }
  0xed   : > { %3110 = vmatpush3.bf16.msra.mxu1 %v3483_v33 }
  0xee   : > { %820 = vmatmul.mubr.bf16.vlgmr.msra.gmra.mxu0 %v614_v19  ;;  %3111 = vmatprep.subr.bf16.mxu1 %v3852_v21 }
  0xef   : > { %3149 = vmatprep.mubr.msk.bf16.mxu0 %vm3853_vm0, %v3852_v21 }
  0xf1   : > { %3112 = vmatpush3.bf16.msra.mxu1 %v3484_v37 }
  0xf2   : > { %3117 = vmatprep.subr.bf16.mxu1 %v3852_v21 }
  0xf4   : > { %3114 = vmatmul.mubr.bf16.vlgmr.msra.gmra.mxu1 %v614_v19 }
  0xf5   : > { %3121 = vmatprep.mubr.msk.bf16.mxu1 %vm3853_vm0, %v3852_v21 }
 0x1ae   : > { %v821_v32 = vpop.f32.mrf.mxu0 }
 0x1af   : > { %v822_v42 = vadd.f32 %v821_v32, %v650_v41 }
 0x1b0   : > { %v823_v34 = vpop.f32.mrf.mxu0 }
 0x1b1   : > { %v4237_v35 = vadd.f32 %v823_v34, %v654_v31  ;;  %v868_v43 = vpack.c.bf16 %v822_v42, %v822_v42 }
 0x1b2   : > { %v825_v36 = vpop.f32.mrf.mxu0 }
 0x1b3   : > { %869 = vxpose.xlu0.b32.start.end [1/1] (short) (narrow) %v4237_v35, 32 }
 0x1b4   : > { %v826_v38 = vpop.f32.mrf.mxu0  ;;  %v862_v52 = vpop.f32.mrf.mxu1 }
 0x1b5   : > { %v863_v53 = vadd.f32 %v862_v52, %v658_v51 }
 0x1b6   : > { %v3115_v54 = vpop.f32.mrf.mxu1 }
 0x1b7   : > { %v4269_v55 = vpack.c.bf16 %v863_v53, %v863_v53 }
 0x1b8   : > { %v865_v56 = vpop.f32.mrf.mxu1 }
 0x1b9   : > { %v968_v57 = vsel %vm966_vm2, %v4269_v55, 0 }
 0x1ba   : > { %v3116_v58 = vpop.f32.mrf.mxu1 }
 0x1dc   : > { %3430 = vset.pattern.permute.xlu0 %v3851_v3 }
 0x1e8   : > { %603 = vperm.xlu0 %3430, %v599_v40  }
 0x1ec   : > { %1301 = vrot.lane.b32.xlu0 %v4237_v35, %s3854_s4 }
 0x1f0   : > { %1049 = vrot.lane.b32.xlu0 %v868_v43, %s3855_s24 }
 0x22f   : > { %v885_v44 = vpop.trf.xlu0 }
 0x233   : > { %v886_v45 = vpop.trf.xlu0 }
 0x234   : > { %v901_v49 = vpack.c.bf16 %v886_v45, %v885_v44 }
 0x237   : > { %v887_v46 = vpop.trf.xlu0 }
 0x23b   : > { %v888_v47 = vpop.trf.xlu0 }
 0x23c   : > { %v902_v48 = vpack.c.bf16 %v888_v47, %v887_v46 }
 0x23e   : > { %3118 = vmatpush3.bf16.msra.mxu1 %v902_v48 }
 0x23f   : > { %3119 = vmatprep.subr.bf16.mxu1 %v3852_v21 }
 0x242   : > { %3120 = vmatpush3.bf16.msra.mxu1 %v901_v49 }
 0x243   : > { %3125 = vmatprep.subr.bf16.mxu1 %v3852_v21 }
 0x245   : > { %3122 = vmatmul.mubr.msk.bf16.vlgmr.msra.gmra.mxu1 %vm903_vm1, %v868_v43 }
 0x246   : > { %3127 = vmatprep.mubr.msk.bf16.mxu1 %vm3853_vm0, %v3852_v21  ;;  %3126 = vmatpush3.bf16.msra.mxu1 %v968_v57 }
 0x247   : > { %3131 = vmatprep.subr.bf16.mxu1 %v3852_v21 }
 0x263   : > { %v604_v60 = vpop.permute.xlu0 %603 }
 0x264   : > { %vm612_vm3 = vcmp.eq.f32.partialorder %v604_v60, %v2830_v59 }
 0x265   : > { %v4277_v62 = vsel %vm612_vm3, 0.0, %v3856_v61 }
 0x267   : > { %v1302_v15 = vpop.permute.xlu0 %1301 }
 0x26b   : > { %v1050_v16 = vpop.permute.xlu0 %1049 }
 0x305   : > { %v941_v63 = vpop.f32.mrf.mxu1 }
 0x306   : > { %v947_v0 = vmul.f32 0.17677669, %v941_v63 }
 0x307   : > { %v3123_v1 = vpop.f32.mrf.mxu1 }
 0x308   : > { %v948_v2 = vadd.f32 %v947_v0, %v4277_v62 }
 0x309   : > { %v944_v4 = vpop.f32.mrf.mxu1 }
 0x30a   : > { %v950_v5 = vsel %vm949_vm4, %v948_v2, -inf }
 0x30b   : > { %951 = vmax.xlane.f32.xlu1 %v950_v5  ;;  %v3124_v6 = vpop.f32.mrf.mxu1 }
 0x31c   : > { %1011 = vrot.lane.b32.xlu1 %v4237_v35, %s3855_s24 }
 0x320   : > { %1157 = vrot.lane.b32.xlu1 %v4237_v35, %s3857_s28 }
 0x324   : > { %1194 = vrot.lane.b32.xlu1 %v868_v43, %s3857_s28 }
 0x394   : > { %v952_v7 = vpop.xlane.xlu1 %951 }
 0x395   : > { %v953_v8 = vsub.f32 %v948_v2, %v952_v7 }
 0x397   : > { %v954_v9 = vmul.f32 1.442695, %v953_v8 }
 0x398   : > { %v1012_v10 = vpop.permute.xlu1 %1011 }
 0x399   : > { %3573 = vpow2.f32 %v954_v9 }
 0x39c   : > { %v1158_v11 = vpop.permute.xlu1 %1157 }
 0x39d   : > { %v3431_v12 = vpack.i.bf16 %v1158_v11, %v1012_v10 }
 0x39f   : > { %3432 = vxpose.xlu0.b32.start.end [1/1] (short) (narrow) %v3431_v12, 32 }
 0x3a0   : > { %v1195_v31 = vpop.permute.xlu1 %1194 }
 0x3a6   : > { %v3574_v13 = vpop.eup %3573 }
 0x3a7   : > { %v956_v14 = vsel %vm949_vm4, %v3574_v13, 0.0 }
 0x3a8   : > { %957 = vadd.xlane.f32.xlu1 %v956_v14 }
 0x3b9   : > { %1338 = vrot.lane.b32.xlu1 %v868_v43, %s3854_s4 }
 0x3e2   : > { %1304 = vxpose.xlu1.b32.start.end [1/1] (short) (narrow) %v1302_v15, 32 }
 0x41b   : > { %v3433_v17 = vpop.trf.xlu0 }
 0x41c   : > { %v3437_v23 = vunpack.i.h.bf16 %v3433_v17  ;;  %v3434_v37 = vunpack.i.l.bf16 %v3433_v17 }
 0x41f   : > { %v3438_v19 = vpop.trf.xlu0 }
 0x420   : > { %v3442_v25 = vunpack.i.h.bf16 %v3438_v19  ;;  %v3439_v38 = vunpack.i.l.bf16 %v3438_v19 }
 0x422   : > { %v1192_v30 = vpack.c.bf16 %v3442_v25, %v3437_v23  ;;  %v1046_v42 = vpack.c.bf16 %v3439_v38, %v3434_v37 }
 0x423   : > { %v3443_v20 = vpop.trf.xlu0 }
 0x424   : > { %v3447_v22 = vunpack.i.h.bf16 %v3443_v20  ;;  %v3444_v33 = vunpack.i.l.bf16 %v3443_v20 }
 0x427   : > { %v3448_v24 = vpop.trf.xlu0 }
 0x428   : > { %v3452_v26 = vunpack.i.h.bf16 %v3448_v24  ;;  %v3449_v34 = vunpack.i.l.bf16 %v3448_v24 }
 0x42a   : > { %v1193_v27 = vpack.c.bf16 %v3452_v26, %v3447_v22  ;;  %v1047_v40 = vpack.c.bf16 %v3449_v34, %v3444_v33 }
 0x42c   : > { %3146 = vmatpush3.bf16.msra.mxu0 %v1193_v27 }
 0x42d   : > { %3147 = vmatprep.subr.bf16.mxu0 %v3852_v21 }
 0x430   : > { %3148 = vmatpush3.bf16.msra.mxu0 %v1192_v30 }
 0x431   : > { %v958_v32 = vpop.xlane.xlu1 %957  ;;  %3159 = vmatprep.subr.bf16.mxu0 %v3852_v21 }
 0x432   : > { %3575 = vrcp.f32 %v958_v32 }
 0x433   : > { %3150 = vmatmul.mubr.msk.bf16.vlgmr.msra.gmra.mxu0 %vm903_vm1, %v1195_v31 }
 0x434   : > { %3163 = vmatprep.mubr.msk.bf16.mxu0 %vm3853_vm0, %v3852_v21 }
 0x435   : > { %v1339_v43 = vpop.permute.xlu1 %1338 }
 0x43f   : > { %v3576_v35 = vpop.eup %3575 }
 0x440   : > { %v960_v36 = vmul.f32 %v3576_v35, %v3574_v13 }
 0x442   : > { %v961_v41 = vpack.c.bf16 %v960_v36, %v960_v36 }
 0x444   : > { %3128 = vmatmul.mubr.msk.bf16.vlgmr.msra.gmra.mxu1 %vm949_vm4, %v961_v41 }
 0x445   : > { %3132 = vmatpush3.bf16.msra.mxu1 %v1047_v40  ;;  %3135 = vmatprep.mubr.msk.bf16.mxu1 %vm3853_vm0, %v3852_v21 }
 0x446   : > { %3133 = vmatprep.subr.bf16.mxu1 %v3852_v21 }
 0x449   : > { %3134 = vmatpush3.bf16.msra.mxu1 %v1046_v42 }
 0x44a   : > { %3139 = vmatprep.subr.bf16.mxu1 %v3852_v21 }
 0x44c   : > { %3136 = vmatmul.mubr.msk.bf16.vlgmr.msra.gmra.mxu1 %vm903_vm1, %v1050_v16 }
 0x44d   : > { %3141 = vmatprep.mubr.msk.bf16.mxu1 %vm3853_vm0, %v3852_v21 }
 0x45e   : > { %v1320_v44 = vpop.trf.xlu1 }
 0x462   : > { %v1321_v45 = vpop.trf.xlu1 }
 0x463   : > { %v1336_v49 = vpack.c.bf16 %v1321_v45, %v1320_v44 }
 0x466   : > { %v1322_v46 = vpop.trf.xlu1 }
 0x46a   : > { %v1323_v47 = vpop.trf.xlu1 }
 0x46b   : > { %v1337_v48 = vpack.c.bf16 %v1323_v47, %v1322_v46 }
 0x46d   : > { %3160 = vmatpush3.bf16.msra.mxu0 %v1337_v48 }
 0x46e   : > { %3161 = vmatprep.subr.bf16.mxu0 %v3852_v21 }
 0x471   : > { %3162 = vmatpush3.bf16.msra.mxu0 %v1336_v49 }
 0x472   : > { %3173 = vmatprep.subr.bf16.mxu0 %v3852_v21 }
 0x474   : > { %3164 = vmatmul.mubr.msk.bf16.vlgmr.msra.gmra.mxu0 %vm903_vm1, %v1339_v43 }
 0x475   : > { %3189 = vmatprep.mubr.msk.bf16.mxu0 %vm3853_vm0, %v3852_v21 }
 0x4f3   : > { %v1233_v51 = vpop.f32.mrf.mxu0 }
 0x4f4   : > { %v1239_v52 = vmul.f32 0.17677669, %v1233_v51 }
 0x4f5   : > { %v3151_v53 = vpop.f32.mrf.mxu0 }
 0x4f6   : > { %v1240_v54 = vadd.f32 %v1239_v52, %v4277_v62  ;;  %v3485_v52 = vld [vmem:[%s4169_s0 + $0x38] sm:$0xff]   ;;  %v3486_v53 = vld [vmem:[%s4169_s0 + $0x30] sm:$0xff]  }
 0x4f7   : > { %v1236_v56 = vpop.f32.mrf.mxu0  ;;  %3174 = vmatpush3.bf16.msra.mxu0 %v3485_v52  ;;  %v3528_v52 = vld [vmem:[%s4175_s11 + $0x4c] ss:$16 sps:$4 sm:$0xff]  }
 0x4f8   : > { %v1241_v57 = vsel %vm949_vm4, %v1240_v54, -inf  ;;  %3175 = vmatprep.subr.bf16.mxu0 %v3852_v21  ;;  %v3488_v56 = vld [vmem:[%s4169_s0 + $0x20] sm:$0xff]  }
 0x4f9   : > { %1242 = vmax.xlane.f32.xlu1 %v1241_v57  ;;  %v3152_v58 = vpop.f32.mrf.mxu0  ;;  %v3489_v57 = vld [vmem:[%s4169_s0 + $0x18] sm:$0xff]  }
 0x4fa   : > { %v3490_v58 = vld [vmem:[%s4169_s0 + $0x10] sm:$0xff]  }
 0x4fb   : > { %3176 = vmatpush3.bf16.msra.mxu0 %v3486_v53  ;;  %v3523_v53 = vld [vmem:[%s4175_s11 + $0x40] ss:$16 sps:$4 sm:$0xff]  }
 0x4fc   : > { %3177 = vmatprep.subr.bf16.mxu0 %v3852_v21 }
 0x504   : > { %v4308_v59 = vpop.f32.mrf.mxu1 }
 0x506   : > { %v3129_v60 = vpop.f32.mrf.mxu1 }
 0x507   : > { %v3491_v60 = vld [vmem:[%s4169_s0 + $0x8] sm:$0xff]  }
 0x508   : > { %v1007_v61 = vpop.f32.mrf.mxu1 }
 0x50a   : > { %1253 = vrot.lane.b32.xlu1 %v4269_v55, %s3857_s28  ;;  %v3130_v63 = vpop.f32.mrf.mxu1 }
 0x50c   : > { %v1088_v0 = vpop.f32.mrf.mxu1 }
 0x50d   : > { %v1094_v1 = vmul.f32 0.17677669, %v1088_v0  ;;  %v3492_v0 = vld [vmem:[%s4169_s0] sm:$0xff]  }
 0x50e   : > { %v3137_v2 = vpop.f32.mrf.mxu1 }
 0x50f   : > { %v1095_v4 = vadd.f32 %v1094_v1, %v4277_v62 }
 0x510   : > { %v1091_v5 = vpop.f32.mrf.mxu1 }
 0x511   : > { %v1096_v6 = vsel %vm949_vm4, %v1095_v4, -inf }
 0x512   : > { %1097 = vmax.xlane.f32.xlu0 %v1096_v6  ;;  %v3138_v7 = vpop.f32.mrf.mxu1 }
 0x534   : > { %v1377_v8 = vpop.f32.mrf.mxu0 }
 0x535   : > { %v1383_v9 = vmul.f32 0.17677669, %v1377_v8 }
 0x536   : > { %v3165_v10 = vpop.f32.mrf.mxu0 }
 0x537   : > { %v1384_v11 = vadd.f32 %v1383_v9, %v4277_v62 }
 0x538   : > { %v1380_v12 = vpop.f32.mrf.mxu0 }
 0x539   : > { %v1385_v13 = vsel %vm949_vm4, %v1384_v11, -inf }
 0x53a   : > { %v3166_v14 = vpop.f32.mrf.mxu0  ;;  %1386 = vmax.xlane.f32.xlu0 %v1385_v13 }
 0x582   : > { %v1243_v15 = vpop.xlane.xlu1 %1242 }
 0x583   : > { %v1244_v16 = vsub.f32 %v1240_v54, %v1243_v15  ;;  %v3487_v54 = vld [vmem:[%s4169_s0 + $0x28] sm:$0xff]  }
 0x584   : > { %3178 = vmatpush3.bf16.msra.mxu0 %v3487_v54  ;;  %v3526_v54 = vld [vmem:[%s4175_s11 + $0x48] ss:$16 sps:$4 sm:$0xff]  }
 0x585   : > { %v1245_v17 = vmul.f32 1.442695, %v1244_v16  ;;  %3179 = vmatprep.subr.bf16.mxu0 %v3852_v21 }
 0x586   : > { %v1254_v41 = vpop.permute.xlu1 %1253 }
 0x587   : > { %3577 = vpow2.f32 %v1245_v17  ;;  %v1259_v44 = vsel %vm966_vm2, %v1254_v41, 0  ;;  %v3505_v41 = vld [vmem:[%s4175_s11 + $0xa0] ss:$16 sps:$4 sm:$0xff]  }
 0x588   : > { %3180 = vmatpush3.bf16.msra.mxu0 %v3488_v56  ;;  %v3531_v56 = vld [vmem:[%s4175_s11 + $0x24] ss:$16 sps:$4 sm:$0xff]  }
 0x589   : > { %3181 = vmatprep.subr.bf16.mxu0 %v3852_v21 }
 0x58c   : > { %3182 = vmatpush3.bf16.msra.mxu0 %v3489_v57  ;;  %v3534_v57 = vld [vmem:[%s4175_s11 + $0x2c] ss:$16 sps:$4 sm:$0xff]  }
 0x58d   : > { %3183 = vmatprep.subr.bf16.mxu0 %v3852_v21 }
 0x590   : > { %3184 = vmatpush3.bf16.msra.mxu0 %v3490_v58  ;;  %v3529_v58 = vld [vmem:[%s4175_s11 + $0x20] ss:$16 sps:$4 sm:$0xff]  }
 0x591   : > { %3185 = vmatprep.subr.bf16.mxu0 %v3852_v21 }
 0x594   : > { %v3578_v19 = vpop.eup %3577  ;;  %3186 = vmatpush3.bf16.msra.mxu0 %v3491_v60  ;;  %v3532_v60 = vld [vmem:[%s4175_s11 + $0x28] ss:$16 sps:$4 sm:$0xff]  }
 0x595   : > { %v1247_v20 = vsel %vm949_vm4, %v3578_v19, 0.0  ;;  %3187 = vmatprep.subr.bf16.mxu0 %v3852_v21 }
 0x596   : > { %1248 = vadd.xlane.f32.xlu0 %v1247_v20 }
 0x598   : > { %3188 = vmatpush3.bf16.msra.mxu0 %v3492_v0  ;;  %v3535_v0 = vld [vmem:[%s4175_s11] ss:$16 sps:$4 sm:$0xff]  }
 0x59b   : > { %v1098_v22 = vpop.xlane.xlu0 %1097 }
 0x59c   : > { %v1099_v23 = vsub.f32 %v1095_v4, %v1098_v22 }
 0x59e   : > { %v1100_v26 = vmul.f32 1.442695, %v1099_v23 }
 0x5c3   : > { %v1387_v24 = vpop.xlane.xlu0 %1386 }
 0x5c4   : > { %v1388_v25 = vsub.f32 %v1384_v11, %v1387_v24 }
 0x5c6   : > { %v1389_v27 = vmul.f32 1.442695, %v1388_v25 }
 0x5c8   : > { %3579 = vpow2.f32 %v1389_v27  ;;  %v3493_v27 = vld [vmem:[%s4175_s11 + $0xe0] ss:$16 sps:$4 sm:$0xff]  }
 0x5c9   : > { %3581 = vpow2.f32 %v1100_v26 }
 0x5d5   : > { %v3580_v62 = vpop.eup %3579 }
 0x5d6   : > { %v1391_v30 = vsel %vm949_vm4, %v3580_v62, 0.0  ;;  %v3582_v31 = vpop.eup %3581 }
 0x5d7   : > { %1392 = vadd.xlane.f32.xlu0 %v1391_v30  ;;  %v1102_v32 = vsel %vm949_vm4, %v3582_v31, 0.0  ;;  %v3496_v30 = vld [vmem:[%s4175_s11 + $0xe8] ss:$16 sps:$4 sm:$0xff]  }
 0x5db   : > { %1103 = vadd.xlane.f32.xlu0 %v1102_v32  ;;  %v3504_v32 = vld [vmem:[%s4175_s11 + $0xcc] ss:$16 sps:$4 sm:$0xff]  }
 0x5f1   : > { %1109 = vrot.lane.b32.xlu0 %v4269_v55, %s3855_s24 }
 0x5f5   : > { %1397 = vrot.lane.b32.xlu0 %v4269_v55, %s3854_s4 }
 0x61f   : > { %v1249_v33 = vpop.xlane.xlu0 %1248 }
 0x660   : > { %v1393_v34 = vpop.xlane.xlu0 %1392 }
 0x664   : > { %v1104_v35 = vpop.xlane.xlu0 %1103 }
 0x665   : > { %3583 = vrcp.f32 %v1104_v35 }
 0x666   : > { %3585 = vrcp.f32 %v1249_v33  ;;  %v3502_v33 = vld [vmem:[%s4175_s11 + $0xc8] ss:$16 sps:$4 sm:$0xff]  }
 0x667   : > { %3587 = vrcp.f32 %v1393_v34 }
 0x668   : > { %v1110_v36 = vpop.permute.xlu0 %1109 }
 0x669   : > { %v1115_v37 = vsel %vm966_vm2, %v1110_v36, 0 }
 0x66a   : > { %3140 = vmatpush3.bf16.msra.mxu1 %v1115_v37 }
 0x66b   : > { %3153 = vmatprep.subr.bf16.mxu1 %v3852_v21 }
 0x66c   : > { %v1398_v45 = vpop.permute.xlu0 %1397 }
 0x66d   : > { %v1403_v48 = vsel %vm966_vm2, %v1398_v45, 0  ;;  %v3516_v45 = vld [vmem:[%s4175_s11 + $0x8c] ss:$16 sps:$4 sm:$0xff]  }
 0x672   : > { %v3584_v38 = vpop.eup %3583 }
 0x673   : > { %v1106_v40 = vmul.f32 %v3584_v38, %v3582_v31  ;;  %v3586_v43 = vpop.eup %3585  ;;  %v3498_v31 = vld [vmem:[%s4175_s11 + $0xec] ss:$16 sps:$4 sm:$0xff]   ;;  %v3507_v38 = vld [vmem:[%s4175_s11 + $0xa4] ss:$16 sps:$4 sm:$0xff]  }
 0x674   : > { %v1251_v55 = vmul.f32 %v3586_v43, %v3578_v19  ;;  %v3588_v47 = vpop.eup %3587  ;;  %v1570_v19 = vsub.s32 1, %v4229_v28  ;;  %1845 = vmatprep.subr.bf16.mxu0 %v3498_v31  ;;  %v3511_v43 = vld [vmem:[%s4175_s11 + $0x80] ss:$16 sps:$4 sm:$0xff]  }
 0x675   : > { %v1107_v42 = vpack.c.bf16 %v1106_v40, %v1106_v40  ;;  %v1395_v49 = vmul.f32 %v3588_v47, %v3580_v62  ;;  %v3495_v62 = vld [vmem:[%s4175_s11 + $0xe4] ss:$16 sps:$4 sm:$0xff]   ;;  %v3510_v40 = vld [vmem:[%s4175_s11 + $0xac] ss:$16 sps:$4 sm:$0xff]  }
 0x676   : > { %v1252_v46 = vpack.c.bf16 %v1251_v55, %v1251_v55  ;;  %v1571_v20 = vrot.slane %v4251_v39, %v1570_v19  ;;  %v3514_v55 = vld [vmem:[%s4175_s11 + $0x88] ss:$16 sps:$4 sm:$0xff]   ;;  %v3522_v47 = vld [vmem:[%s4175_s11 + $0x6c] ss:$16 sps:$4 sm:$0xff]   ;;  %v3545_v19 = vld [vmem:[%s4177_s21 + $0x70] sm:$0xff]  }
 0x677   : > { %3142 = vmatmul.mubr.msk.bf16.vlgmr.msra.gmra.mxu1 %vm949_vm4, %v1107_v42  ;;  %v1396_v51 = vpack.c.bf16 %v1395_v49, %v1395_v49  ;;  %v3508_v42 = vld [vmem:[%s4175_s11 + $0xa8] ss:$16 sps:$4 sm:$0xff]   ;;  %v3556_v31 = vld [vmem:[%s4177_s21 + $0xa0] sm:$0xff]  }
 0x678   : > { %3154 = vmatpush3.bf16.msra.mxu1 %v1259_v44  ;;  %3155 = vmatprep.mubr.msk.bf16.mxu1 %vm3853_vm0, %v3852_v21  ;;  %v3513_v44 = vld [vmem:[%s4175_s11 + $0x84] ss:$16 sps:$4 sm:$0xff]   ;;  %v3520_v49 = vld [vmem:[%s4175_s11 + $0x68] ss:$16 sps:$4 sm:$0xff]  }
 0x679   : > { %3167 = vmatprep.subr.bf16.mxu1 %v3852_v21 }
 0x67f   : > { %3156 = vmatmul.mubr.msk.bf16.vlgmr.msra.gmra.mxu1 %vm949_vm4, %v1252_v46  ;;  %v3519_v46 = vld [vmem:[%s4175_s11 + $0x64] ss:$16 sps:$4 sm:$0xff]  }
 0x680   : > { %3168 = vmatpush3.bf16.msra.mxu1 %v1403_v48  ;;  %3169 = vmatprep.mubr.msk.bf16.mxu1 %vm3853_vm0, %v3852_v21  ;;  %v3517_v48 = vld [vmem:[%s4175_s11 + $0x60] ss:$16 sps:$4 sm:$0xff]  }
 0x681   : > { %1804 = vmatprep.subr.bf16.mxu1 %v3495_v62  ;;  %v3554_v62 = vld [vmem:[%s4177_s21 + $0xe0] sm:$0xff]  }
 0x687   : > { %3170 = vmatmul.mubr.msk.bf16.vlgmr.msra.gmra.mxu1 %vm949_vm4, %v1396_v51  ;;  %v3525_v51 = vld [vmem:[%s4175_s11 + $0x44] ss:$16 sps:$4 sm:$0xff]  }
 0x688   : > { %1836 = vmatprep.mubr.bf16.mxu1 %v3851_v3  ;;  %1805 = vmatpush1.bf16.msra.mxu1 %v3493_v27  ;;  %v3553_v27 = vld [vmem:[%s4177_s21 + $0x60] sm:$0xff]  }
 0x737   : > { %v1151_v61 = vpop.f32.mrf.mxu1 }
 0x738   : > { %1446 = vrot.lane.b32.xlu1 %v1151_v61, %s3854_s4  ;;  %v3537_v61 = vld [vmem:[%s4175_s11 + $0x4] ss:$16 sps:$4 sm:$0xff]  }
 0x739   : > { %v3143_v63 = vpop.f32.mrf.mxu1 }
 0x73a   : > { %v3540_v63 = vld [vmem:[%s4175_s11 + $0xc] ss:$16 sps:$4 sm:$0xff]  }
 0x73b   : > { %v1154_v1 = vpop.f32.mrf.mxu1 }
 0x73c   : > { %v3538_v1 = vld [vmem:[%s4175_s11 + $0x8] ss:$16 sps:$4 sm:$0xff]  }
 0x73d   : > { %v3144_v2 = vpop.f32.mrf.mxu1 }
 0x73e   : > { %v3541_v2 = vld [vmem:[%s4177_s21 + $0x78] sm:$0xff]  }
 0x73f   : > { %v1295_v4 = vpop.f32.mrf.mxu1 }
 0x740   : > { %1450 = vrot.lane.b32.xlu0 %v1295_v4, %s3857_s28  ;;  %v3542_v4 = vld [vmem:[%s4177_s21 + $0xf8] sm:$0xff]  }
 0x741   : > { %v3157_v5 = vpop.f32.mrf.mxu1 }
 0x743   : > { %v1298_v6 = vpop.f32.mrf.mxu1 }
 0x745   : > { %v3158_v7 = vpop.f32.mrf.mxu1 }
 0x747   : > { %v1439_v8 = vpop.f32.mrf.mxu1 }
 0x748   : > { %1454 = vrot.lane.b32.xlu1 %v1439_v8, %s3855_s24  ;;  %v1587_v8 = vsub.s32 2, %v4229_v28 }
 0x749   : > { %v3171_v9 = vpop.f32.mrf.mxu1 }
 0x74a   : > { %v1592_v9 = vsub.s32 3, %v4229_v28 }
 0x74b   : > { %v1442_v10 = vpop.f32.mrf.mxu1 }
 0x74c   : > { %v1588_v10 = vrot.slane %v4251_v39, %v1587_v8 }
 0x74d   : > { %v3172_v11 = vpop.f32.mrf.mxu1 }
 0x7aa   : > { %v1447_v12 = vpop.permute.xlu1 %1446 }
 0x7ab   : > { %v1457_v21 = vsel %vm903_vm1, %v4308_v59, %v1447_v12 }
 0x7b2   : > { %v1451_v13 = vpop.permute.xlu0 %1450 }
 0x7b3   : > { %v1459_v14 = vsel %vm1458_vm5, %v1457_v21, %v1451_v13  ;;  %v1593_v13 = vrot.slane %v4251_v39, %v1592_v9 }
 0x7ba   : > { %v1455_v15 = vpop.permute.xlu1 %1454 }
 0x7bb   : > { %v1461_v16 = vsel %vm1460_vm6, %v1459_v14, %v1455_v15  ;;  %v3543_v15 = vld [vmem:[%s4177_s21 + $0x38] sm:$0xff]  }
 0x7bc   : > { %v1462_v17 = vpack.c.bf16 %v1461_v16, %v1461_v16  ;;  %v3544_v16 = vld [vmem:[%s4177_s21 + $0xb8] sm:$0xff]  }
 0x7be   : > { %3190 = vmatmul.mubr.bf16.vlgmr.msra.gmra.mxu0 %v1462_v17 }
 0x7bf   : > { %1877 = vmatprep.mubr.bf16.mxu0 %v3851_v3  ;;  %v3501_v3 = vld [vmem:[%s4175_s11 + $0xc4] ss:$16 sps:$4 sm:$0xff]   ;;  %1846 = vmatpush1.bf16.msra.mxu0 %v3496_v30 }
 0x7c0   : > { %1806 = vmatprep.subr.bf16.mxu1 %v3501_v3  ;;  %1847 = vmatprep.subr.bf16.mxu0 %v3504_v32  ;;  %v3555_v30 = vld [vmem:[%s4177_s21 + $0x20] sm:$0xff]   ;;  %v3557_v3 = vld [vmem:[%s4177_s21 + $0x58] sm:$0xff]  }
 0x7c1   : > { %v3558_v32 = vld [vmem:[%s4177_s21 + $0xd8] sm:$0xff]  }
 0x7c3   : > { %1848 = vmatpush1.bf16.msra.mxu0 %v3502_v33  ;;  %v3560_v33 = vld [vmem:[%s4177_s21 + $0x98] sm:$0xff]  }
 0x7c4   : > { %1849 = vmatprep.subr.bf16.mxu0 %v3510_v40  ;;  %v3566_v40 = vld [vmem:[%s4177_s21 + $0xc8] sm:$0xff]  }
 0x7c7   : > { %1850 = vmatpush1.bf16.msra.mxu0 %v3508_v42  ;;  %v3568_v42 = vld [vmem:[%s4177_s21 + $0x88] sm:$0xff]  }
 0x7c8   : > { %1851 = vmatprep.subr.bf16.mxu0 %v3516_v45  ;;  %v3572_v45 = vld [vmem:[%s4177_s21 + $0x80] sm:$0xff]  }
 0x7cb   : > { %1852 = vmatpush1.bf16.msra.mxu0 %v3514_v55  ;;  %v3571_v55 = vld [vmem:[%s4177_s21] sm:$0xff]  }
 0x7cc   : > { %1853 = vmatprep.subr.bf16.mxu0 %v3522_v47  ;;  %v598_v47 = vld [vmem:[%s4183_s18 + $0x18] sm:$0xff] }
 0x7cf   : > { %1854 = vmatpush1.bf16.msra.mxu0 %v3520_v49 }
 0x7d0   : > { %1855 = vmatprep.subr.bf16.mxu0 %v3528_v52 }
 0x7d3   : > { %1856 = vmatpush1.bf16.msra.mxu0 %v3526_v54 }
 0x7d4   : > { %1857 = vmatprep.subr.bf16.mxu0 %v3534_v57 }
 0x7d7   : > { %1858 = vmatpush1.bf16.msra.mxu0 %v3532_v60 }
 0x7d8   : > { %1859 = vmatprep.subr.bf16.mxu0 %v3540_v63 }
 0x7db   : > { %1860 = vmatpush1.bf16.msra.mxu0 %v3538_v1 }
 0x7dc   : > { %3007 = vmatprep.subr.bf16.mxu0 %v3542_v4 }
 0x87e   : > { %v1561_v22 = vpop.f32.mrf.mxu0 }
 0x87f   : > { %v1567_v59 = vadd.f32 %v1561_v22, %v4211_v18  ;;  %v3499_v18 = vld [vmem:[%s4175_s11 + $0xc0] ss:$16 sps:$4 sm:$0xff]   ;;  %s4617_s11 = sld [smem:[#allocation30_spill]] (!%p2935_p11) }
 0x880   : > { %v3191_v23 = vpop.f32.mrf.mxu0  ;;  %1807 = vmatpush1.bf16.msra.mxu1 %v3499_v18  ;;  %v3547_v22 = vld [vmem:[%s4177_s21 + $0x30] sm:$0xff]   ;;  %v3559_v18 = vld [vmem:[%s4177_s21 + $0x18] sm:$0xff]  }
 0x881   : > { %v1572_v24 = vadd.f32 %v1571_v20, %v1567_v59  ;;  %1808 = vmatprep.subr.bf16.mxu1 %v3507_v38  ;;  %v3546_v20 = vld [vmem:[%s4177_s21 + $0xf0] sm:$0xff]   ;;  %v3549_v23 = vld [vmem:[%s4177_s21 + $0x68] sm:$0xff]  }
 0x882   : > { %v1564_v25 = vpop.f32.mrf.mxu0  ;;  %v3548_v59 = vld [vmem:[%s4177_s21 + $0xb0] sm:$0xff]   ;;  %v3565_v38 = vld [vmem:[%s4177_s21 + $0x48] sm:$0xff]  }
 0x883   : > { %1573 = vadd.xlane.f32.xlu0 %v1572_v24  ;;  %v3551_v25 = vld [vmem:[%s4177_s21 + $0x28] sm:$0xff]  }
 0x884   : > { %v3192_v26 = vpop.f32.mrf.mxu0  ;;  %1809 = vmatpush1.bf16.msra.mxu1 %v3505_v41  ;;  %v3567_v41 = vld [vmem:[%s4177_s21 + $0x8] sm:$0xff]  }
 0x885   : > { %1810 = vmatprep.subr.bf16.mxu1 %v3513_v44  ;;  %v3552_v26 = vld [vmem:[%s4177_s21 + $0xa8] sm:$0xff]   ;;  %v3570_v44 = vld [vmem:[%s4177_s21 + $0xc0] sm:$0xff]  }
 0x888   : > { %1811 = vmatpush1.bf16.msra.mxu1 %v3511_v43  ;;  %v3569_v43 = vld [vmem:[%s4177_s21 + $0x40] sm:$0xff]  }
 0x889   : > { %1812 = vmatprep.subr.bf16.mxu1 %v3519_v46  ;;  %v1630_v46 = vsub.s32 4, %v4229_v28 }
 0x88b   : > { %v1639_v49 = vrot.slane %v4266_v50, %v1630_v46  ;;  %v1643_v52 = vrot.slane %v598_v47, %v1630_v46 }
 0x88c   : > { %1813 = vmatpush1.bf16.msra.mxu1 %v3517_v48  ;;  %v1631_v48 = vrot.slane %v4251_v39, %v1630_v46 }
 0x88d   : > { %1814 = vmatprep.subr.bf16.mxu1 %v3525_v51  ;;  %v1635_v51 = vrot.slane %v4232_v29, %v1630_v46 }
 0x890   : > { %1815 = vmatpush1.bf16.msra.mxu1 %v3523_v53 }
 0x891   : > { %1816 = vmatprep.subr.bf16.mxu1 %v3531_v56 }
 0x894   : > { %1817 = vmatpush1.bf16.msra.mxu1 %v3529_v58 }
 0x895   : > { %1818 = vmatprep.subr.bf16.mxu1 %v3537_v61 }
 0x898   : > { %1819 = vmatpush1.bf16.msra.mxu1 %v3535_v0 }
 0x899   : > { %2985 = vmatprep.subr.bf16.mxu1 %v3541_v2 }
 0x90c   : > { %v1574_v34 = vpop.xlane.xlu0 %1573 }
 0x90d   : > { %v1576_v35 = vmul.f32 0.0078125, %v1574_v34  ;;  %v3561_v34 = vld [vmem:[%s4177_s21 + $0x50] sm:$0xff]  }
 0x90f   : > { %v4368_v36 = vsub.f32 %v1572_v24, %v1576_v35  ;;  %v3550_v24 = vld [vmem:[%s4177_s21 + $0xe8] sm:$0xff]   ;;  %v3562_v35 = vld [vmem:[%s4177_s21 + $0xd0] sm:$0xff]  }
 0x911   : > { %v1578_v37 = vmul.f32 %v4368_v36, %v4368_v36 }
 0x913   : > { %1579 = vadd.xlane.f32.xlu1 %v1578_v37  ;;  %v3564_v37 = vld [vmem:[%s4177_s21 + $0x90] sm:$0xff]  }
 0x99c   : > { %v1580_v5 = vpop.xlane.xlu1 %1579 }
 0x99d   : > { %v1581_v6 = vmul.f32 0.0078125, %v1580_v5 }
 0x99f   : > { %v1582_v7 = vadd.f32 1e-05, %v1581_v6 }
 0x9a1   : > { %3589 = vrsqrt.f32 %v1582_v7 }
 0x9ae   : > { %v3590_v11 = vpop.eup %3589 }
 0x9af   : > { %v1584_v12 = vmul.f32 %v3590_v11, %v4368_v36  ;;  %v3563_v36 = vld [vmem:[%s4177_s21 + $0x10] sm:$0xff]   ;;  %v1960_v11 = vsub.s32 5, %v4229_v28 }
 0x9b1   : > { %v1589_v21 = vmul.f32 %v1588_v10, %v1584_v12 }
 0x9b3   : > { %v4403_v14 = vadd.f32 %v1593_v13, %v1589_v21  ;;  %v1961_v21 = vrot.slane %v4251_v39, %v1960_v11 }
 0x9b5   : > { %v1595_v17 = vpack.c.bf16 %v4403_v14, %v4403_v14 }
 0x9b7   : > { %1837 = vmatmul.mubr.bf16.vlgmr.msra.gmra.mxu1 %v1595_v17  ;;  %1878 = vmatmul.mubr.bf16.vlgmr.msra.gmra.mxu0 %v1595_v17 }
 0x9b8   : > { %2986 = vmatpush3.bf16.msra.mxu1 %v3543_v15  ;;  %3008 = vmatpush3.bf16.msra.mxu0 %v3544_v16 }
 0x9b9   : > { %2987 = vmatprep.subr.bf16.mxu1 %v3545_v19  ;;  %3009 = vmatprep.subr.bf16.mxu0 %v3546_v20 }
 0x9bc   : > { %2988 = vmatpush3.bf16.msra.mxu1 %v3547_v22  ;;  %3010 = vmatpush3.bf16.msra.mxu0 %v3548_v59 }
 0x9bd   : > { %2989 = vmatprep.subr.bf16.mxu1 %v3549_v23  ;;  %3011 = vmatprep.subr.bf16.mxu0 %v3550_v24 }
 0x9c0   : > { %2990 = vmatpush3.bf16.msra.mxu1 %v3551_v25  ;;  %3012 = vmatpush3.bf16.msra.mxu0 %v3552_v26 }
 0x9c1   : > { %2991 = vmatprep.subr.bf16.mxu1 %v3553_v27  ;;  %3013 = vmatprep.subr.bf16.mxu0 %v3554_v62 }
 0x9c4   : > { %2992 = vmatpush3.bf16.msra.mxu1 %v3555_v30  ;;  %3014 = vmatpush3.bf16.msra.mxu0 %v3556_v31 }
 0x9c5   : > { %2993 = vmatprep.subr.bf16.mxu1 %v3557_v3  ;;  %3015 = vmatprep.subr.bf16.mxu0 %v3558_v32 }
 0x9c8   : > { %2994 = vmatpush3.bf16.msra.mxu1 %v3559_v18  ;;  %3016 = vmatpush3.bf16.msra.mxu0 %v3560_v33  ;;  %v2248_v33 = vsub.s32 6, %v4229_v28 }
 0x9c9   : > { %2995 = vmatprep.subr.bf16.mxu1 %v3561_v34  ;;  %3017 = vmatprep.subr.bf16.mxu0 %v3562_v35  ;;  %v2253_v34 = vsub.s32 7, %v4229_v28 }
 0x9ca   : > { %v2249_v35 = vrot.slane %v4251_v39, %v2248_v33 }
 0x9cc   : > { %2996 = vmatpush3.bf16.msra.mxu1 %v3563_v36  ;;  %3018 = vmatpush3.bf16.msra.mxu0 %v3564_v37  ;;  %v2254_v37 = vrot.slane %v4251_v39, %v2253_v34 }
 0x9cd   : > { %2997 = vmatprep.subr.bf16.mxu1 %v3565_v38  ;;  %3019 = vmatprep.subr.bf16.mxu0 %v3566_v40 }
 0x9d0   : > { %2998 = vmatpush3.bf16.msra.mxu1 %v3567_v41  ;;  %3020 = vmatpush3.bf16.msra.mxu0 %v3568_v42 }
 0x9d1   : > { %2999 = vmatprep.subr.bf16.mxu1 %v3569_v43  ;;  %3021 = vmatprep.subr.bf16.mxu0 %v3570_v44 }
 0x9d4   : > { %3000 = vmatpush3.bf16.msra.mxu1 %v3571_v55  ;;  %3022 = vmatpush3.bf16.msra.mxu0 %v3572_v45 }
 0xa77   : > { %v1838_v53 = vpop.f32.mrf.mxu1  ;;  %v1879_v54 = vpop.f32.mrf.mxu0 }
 0xa78   : > { %v1839_v56 = vadd.f32 %v1838_v53, %v1631_v48  ;;  %v1880_v57 = vadd.f32 %v1879_v54, %v1639_v49 }
 0xa79   : > { %v1840_v58 = vpop.f32.mrf.mxu1  ;;  %v1881_v60 = vpop.f32.mrf.mxu0 }
 0xa7a   : > { %v1841_v61 = vadd.f32 %v1840_v58, %v1635_v51  ;;  %v1882_v63 = vadd.f32 %v1881_v60, %v1643_v52  ;;  %v1886_v0 = vmax.f32 %v1839_v56, 0.0  ;;  %v1888_v1 = vmax.f32 %v1880_v57, 0.0 }
 0xa7b   : > { %v1842_v2 = vpop.f32.mrf.mxu1  ;;  %v1883_v4 = vpop.f32.mrf.mxu0 }
 0xa7c   : > { %v1887_v5 = vmax.f32 %v1841_v61, 0.0  ;;  %v1889_v6 = vmax.f32 %v1882_v63, 0.0  ;;  %v1890_v29 = vpack.c.bf16 %v1886_v0, %v1886_v0  ;;  %v1892_v10 = vpack.c.bf16 %v1888_v1, %v1888_v1 }
 0xa7d   : > { %v1843_v7 = vpop.f32.mrf.mxu1  ;;  %v1884_v8 = vpop.f32.mrf.mxu0 }
 0xa7e   : > { %v1891_v50 = vpack.c.bf16 %v1887_v5, %v1887_v5  ;;  %v1893_v9 = vpack.c.bf16 %v1889_v6, %v1889_v6 }
 0xa80   : > { %2186 = vmatprep.mubr.bf16.mxu1 %v1891_v50  ;;  %2226 = vmatprep.mubr.bf16.mxu0 %v1893_v9 }
 0xa81   : > { %2187 = vmatmul.mubr.bf16.vlgmr.msra.gmra.mxu1 %v1890_v29  ;;  %2227 = vmatmul.mubr.bf16.vlgmr.msra.gmra.mxu0 %v1892_v10 }
 0xb41   : > { %v3001_v12 = vpop.f32.mrf.mxu1  ;;  %v3023_v13 = vpop.f32.mrf.mxu0 }
 0xb43   : > { %v3002_v15 = vpop.f32.mrf.mxu1  ;;  %v3024_v16 = vpop.f32.mrf.mxu0 }
 0xb44   : > { %v3003_v17 = vadd.f32 %v3002_v15, %v3001_v12  ;;  %v3025_v59 = vadd.f32 %v3024_v16, %v3023_v13 }
 0xb45   : > { %v3004_v19 = vpop.f32.mrf.mxu1  ;;  %v3026_v20 = vpop.f32.mrf.mxu0 }
 0xb46   : > { %v2189_v22 = vadd.f32 %v3003_v17, %v1961_v21 }
 0xb47   : > { %v3005_v23 = vpop.f32.mrf.mxu1  ;;  %v3027_v24 = vpop.f32.mrf.mxu0 }
 0xb48   : > { %v2229_v25 = vadd.f32 %v3025_v59, %v2189_v22 }
 0xb4a   : > { %v2234_v26 = vadd.f32 %v2229_v25, %v4403_v14 }
 0xb4c   : > { %2235 = vadd.xlane.f32.xlu0 %v2234_v26 }
 0xbd5   : > { %v2236_v27 = vpop.xlane.xlu0 %2235 }
 0xbd6   : > { %v2237_v62 = vmul.f32 0.0078125, %v2236_v27 }
 0xbd8   : > { %v2238_v30 = vsub.f32 %v2234_v26, %v2237_v62 }
 0xbda   : > { %v2239_v31 = vmul.f32 %v2238_v30, %v2238_v30 }
 0xbdc   : > { %2240 = vadd.xlane.f32.xlu0 %v2239_v31 }
 0xc65   : > { %v2241_v3 = vpop.xlane.xlu0 %2240 }
 0xc66   : > { %v2242_v32 = vmul.f32 0.0078125, %v2241_v3 }
 0xc68   : > { %v2243_v18 = vadd.f32 1e-05, %v2242_v32 }
 0xc6a   : > { %3591 = vrsqrt.f32 %v2243_v18 }
 0xc77   : > { %v3592_v36 = vpop.eup %3591 }
 0xc78   : > { %v2245_v14 = vmul.f32 %v3592_v36, %v2238_v30 }
 0xc7a   : > { %v2250_v38 = vmul.f32 %v2249_v35, %v2245_v14  ;;  %2260 = sbr.rel (%p2935_p11) target bundleno = 3775 (0xebf), region = 100 }
 0xc7c   : > { %v4449_v40 = vadd.f32 %v2254_v37, %v2250_v38 }
 0xc7e   : > { %2256 = vst [vmem:[#allocation2] sm:$0xff] %v4449_v40 }
 0xc7f   : > { %v2292_v41 = vld [vmem:[#allocation12 + $0xf8] sm:$0xff]  ;;  %v3858_v43 = vmov 0.0   ;;  %v2291_v28 = vld [vmem:[#allocation12 + $0xf0] sm:$0xff]  ;;  %v2290_v39 = vld [vmem:[#allocation12 + $0xe8] sm:$0xff]  ;;  %v2294_v29 = vrot.slane %v4449_v40, 2  ;;  %vm3859_vm7 = vmmov 0  }
 0xc80   : > { %v2276_v42 = vld [vmem:[#allocation12 + $0x78] sm:$0xff]  ;;  %3193 = vmatprep.subr.mxu0 %v3858_v43  ;;  %3228 = vmatprep.subr.mxu1 %v3858_v43  ;;  %v2275_v44 = vld [vmem:[#allocation12 + $0x70] sm:$0xff]  ;;  %v2274_v55 = vld [vmem:[#allocation12 + $0x68] sm:$0xff]  ;;  %vm2624_vm8 = vcmask 1041408  }
 0xc81   : > { %3194 = vmatpush3.msra.mxu0 %v2292_v41  ;;  %3229 = vmatpush3.msra.mxu1 %v2276_v42  ;;  %v2289_v45 = vld [vmem:[#allocation12 + $0xe0] sm:$0xff]  ;;  %v2288_v47 = vld [vmem:[#allocation12 + $0xd8] sm:$0xff]  ;;  %v2287_v49 = vld [vmem:[#allocation12 + $0xd0] sm:$0xff] }
 0xc82   : > { %3195 = vmatprep.subr.mxu0 %v3858_v43  ;;  %3230 = vmatprep.subr.mxu1 %v3858_v43  ;;  %v2273_v46 = vld [vmem:[#allocation12 + $0x60] sm:$0xff]  ;;  %v2272_v48 = vld [vmem:[#allocation12 + $0x58] sm:$0xff]  ;;  %v2271_v51 = vld [vmem:[#allocation12 + $0x50] sm:$0xff] }
 0xc83   : > { %3196 = vmatpush3.msra.mxu0 %v2291_v28  ;;  %3231 = vmatpush3.msra.mxu1 %v2275_v44  ;;  %v2286_v52 = vld [vmem:[#allocation12 + $0xc8] sm:$0xff]  ;;  %v2285_v54 = vld [vmem:[#allocation12 + $0xc0] sm:$0xff]  ;;  %v2284_v57 = vld [vmem:[#allocation12 + $0xb8] sm:$0xff]  ;;  %v2452_v44 = vrot.slane %v4449_v40, 4 }
 0xc84   : > { %3197 = vmatprep.subr.mxu0 %v3858_v43  ;;  %3232 = vmatprep.subr.mxu1 %v3858_v43  ;;  %v2270_v53 = vld [vmem:[#allocation12 + $0x48] sm:$0xff]  ;;  %v2269_v56 = vld [vmem:[#allocation12 + $0x40] sm:$0xff]  ;;  %v2268_v58 = vld [vmem:[#allocation12 + $0x38] sm:$0xff] }
 0xc85   : > { %3198 = vmatpush3.msra.mxu0 %v2290_v39  ;;  %3233 = vmatpush3.msra.mxu1 %v2274_v55  ;;  %v2283_v60 = vld [vmem:[#allocation12 + $0xb0] sm:$0xff]  ;;  %v2282_v63 = vld [vmem:[#allocation12 + $0xa8] sm:$0xff]  ;;  %v2281_v1 = vld [vmem:[#allocation12 + $0xa0] sm:$0xff]  ;;  %v2541_v39 = vrot.slane %v4449_v40, 6 }
 0xc86   : > { %3199 = vmatprep.subr.mxu0 %v3858_v43  ;;  %3234 = vmatprep.subr.mxu1 %v3858_v43  ;;  %v2267_v61 = vld [vmem:[#allocation12 + $0x30] sm:$0xff]  ;;  %v2266_v0 = vld [vmem:[#allocation12 + $0x28] sm:$0xff]  ;;  %v2265_v2 = vld [vmem:[#allocation12 + $0x20] sm:$0xff] }
 0xc87   : > { %3200 = vmatpush3.msra.mxu0 %v2289_v45  ;;  %3235 = vmatpush3.msra.mxu1 %v2273_v46  ;;  %v2280_v4 = vld [vmem:[#allocation12 + $0x98] sm:$0xff]  ;;  %v2279_v6 = vld [vmem:[#allocation12 + $0x90] sm:$0xff]  ;;  %v2278_v8 = vld [vmem:[#allocation12 + $0x88] sm:$0xff] }
 0xc88   : > { %3201 = vmatprep.subr.mxu0 %v3858_v43  ;;  %3236 = vmatprep.subr.mxu1 %v3858_v43  ;;  %v2264_v5 = vld [vmem:[#allocation12 + $0x18] sm:$0xff]  ;;  %v2263_v7 = vld [vmem:[#allocation12 + $0x10] sm:$0xff]  ;;  %v2262_v50 = vld [vmem:[#allocation12 + $0x8] sm:$0xff] }
 0xc89   : > { %3202 = vmatpush3.msra.mxu0 %v2288_v47  ;;  %3237 = vmatpush3.msra.mxu1 %v2272_v48  ;;  %v2277_v9 = vld [vmem:[#allocation12 + $0x80] sm:$0xff]  ;;  %v2451_v11 = vld [vmem:[#allocation12 + $0x178] sm:$0xff]  ;;  %v2450_v13 = vld [vmem:[#allocation12 + $0x170] sm:$0xff] }
 0xc8a   : > { %3203 = vmatprep.subr.mxu0 %v3858_v43  ;;  %3238 = vmatprep.subr.mxu1 %v3858_v43  ;;  %v2261_v10 = vld [vmem:[#allocation12] sm:$0xff]  ;;  %v2540_v12 = vld [vmem:[#allocation12 + $0x1f8] sm:$0xff]  ;;  %v2539_v21 = vld [vmem:[#allocation12 + $0x1f0] sm:$0xff] }
 0xc8b   : > { %3204 = vmatpush3.msra.mxu0 %v2287_v49  ;;  %3239 = vmatpush3.msra.mxu1 %v2271_v51  ;;  %v2449_v15 = vld [vmem:[#allocation12 + $0x168] sm:$0xff]  ;;  %v2448_v17 = vld [vmem:[#allocation12 + $0x160] sm:$0xff]  ;;  %v2447_v20 = vld [vmem:[#allocation12 + $0x158] sm:$0xff] }
 0xc8c   : > { %3205 = vmatprep.subr.mxu0 %v3858_v43  ;;  %3240 = vmatprep.subr.mxu1 %v3858_v43  ;;  %v2538_v16 = vld [vmem:[#allocation12 + $0x1e8] sm:$0xff]  ;;  %v2537_v19 = vld [vmem:[#allocation12 + $0x1e0] sm:$0xff]  ;;  %v2536_v22 = vld [vmem:[#allocation12 + $0x1d8] sm:$0xff] }
 0xc8d   : > { %3206 = vmatpush3.msra.mxu0 %v2286_v52  ;;  %3241 = vmatpush3.msra.mxu1 %v2270_v53  ;;  %v2446_v59 = vld [vmem:[#allocation12 + $0x150] sm:$0xff]  ;;  %v2445_v24 = vld [vmem:[#allocation12 + $0x148] sm:$0xff]  ;;  %v2444_v26 = vld [vmem:[#allocation12 + $0x140] sm:$0xff] }
 0xc8e   : > { %3207 = vmatprep.subr.mxu0 %v3858_v43  ;;  %3242 = vmatprep.subr.mxu1 %v3858_v43  ;;  %v2535_v23 = vld [vmem:[#allocation12 + $0x1d0] sm:$0xff]  ;;  %v2534_v25 = vld [vmem:[#allocation12 + $0x1c8] sm:$0xff]  ;;  %v2533_v27 = vld [vmem:[#allocation12 + $0x1c0] sm:$0xff] }
 0xc8f   : > { %3208 = vmatpush3.msra.mxu0 %v2285_v54  ;;  %3243 = vmatpush3.msra.mxu1 %v2269_v56  ;;  %v2443_v62 = vld [vmem:[#allocation12 + $0x138] sm:$0xff]  ;;  %v2442_v31 = vld [vmem:[#allocation12 + $0x130] sm:$0xff]  ;;  %v2441_v32 = vld [vmem:[#allocation12 + $0x128] sm:$0xff] }
 0xc90   : > { %3209 = vmatprep.subr.mxu0 %v3858_v43  ;;  %3244 = vmatprep.subr.mxu1 %v3858_v43  ;;  %v2532_v30 = vld [vmem:[#allocation12 + $0x1b8] sm:$0xff]  ;;  %v2531_v3 = vld [vmem:[#allocation12 + $0x1b0] sm:$0xff]  ;;  %v2530_v18 = vld [vmem:[#allocation12 + $0x1a8] sm:$0xff] }
 0xc91   : > { %3210 = vmatpush3.msra.mxu0 %v2284_v57  ;;  %3245 = vmatpush3.msra.mxu1 %v2268_v58  ;;  %v2440_v33 = vld [vmem:[#allocation12 + $0x120] sm:$0xff]  ;;  %v2439_v35 = vld [vmem:[#allocation12 + $0x118] sm:$0xff]  ;;  %v2438_v37 = vld [vmem:[#allocation12 + $0x110] sm:$0xff] }
 0xc92   : > { %3211 = vmatprep.subr.mxu0 %v3858_v43  ;;  %3246 = vmatprep.subr.mxu1 %v3858_v43  ;;  %v2529_v34 = vld [vmem:[#allocation12 + $0x1a0] sm:$0xff]  ;;  %v2528_v36 = vld [vmem:[#allocation12 + $0x198] sm:$0xff]  ;;  %v2527_v14 = vld [vmem:[#allocation12 + $0x190] sm:$0xff] }
 0xc93   : > { %3212 = vmatpush3.msra.mxu0 %v2283_v60  ;;  %3247 = vmatpush3.msra.mxu1 %v2267_v61  ;;  %v2437_v38 = vld [vmem:[#allocation12 + $0x108] sm:$0xff]  ;;  %v2436_v42 = vld [vmem:[#allocation12 + $0x100] sm:$0xff]  ;;  %v2936_v54 = vld [vmem:[%s4615_s19] ss:$0 sm:$0xff] }
 0xc94   : > { %3213 = vmatprep.subr.mxu0 %v3858_v43  ;;  %3248 = vmatprep.subr.mxu1 %v3858_v43  ;;  %v2526_v41 = vld [vmem:[#allocation12 + $0x188] sm:$0xff]  ;;  %v2525_v28 = vld [vmem:[#allocation12 + $0x180] sm:$0xff] }
 0xc95   : > { %3214 = vmatpush3.msra.mxu0 %v2282_v63  ;;  %3249 = vmatpush3.msra.mxu1 %v2266_v0 }
 0xc96   : > { %3215 = vmatprep.subr.mxu0 %v3858_v43  ;;  %3250 = vmatprep.subr.mxu1 %v3858_v43 }
 0xc97   : > { %3216 = vmatpush3.msra.mxu0 %v2281_v1  ;;  %3251 = vmatpush3.msra.mxu1 %v2265_v2 }
 0xc98   : > { %3217 = vmatprep.subr.mxu0 %v3858_v43  ;;  %3252 = vmatprep.subr.mxu1 %v3858_v43 }
 0xc99   : > { %3218 = vmatpush3.msra.mxu0 %v2280_v4  ;;  %3253 = vmatpush3.msra.mxu1 %v2264_v5 }
 0xc9a   : > { %3219 = vmatprep.subr.mxu0 %v3858_v43  ;;  %3254 = vmatprep.subr.mxu1 %v3858_v43 }
 0xc9b   : > { %3220 = vmatpush3.msra.mxu0 %v2279_v6  ;;  %3255 = vmatpush3.msra.mxu1 %v2263_v7  ;;  %v2937_v6 = vld [vmem:[%s4616_s17] ss:$0 sm:$0xff] }
 0xc9c   : > { %3221 = vmatprep.subr.mxu0 %v3858_v43  ;;  %3256 = vmatprep.subr.mxu1 %v3858_v43 }
 0xc9d   : > { %3222 = vmatpush3.msra.mxu0 %v2278_v8  ;;  %3257 = vmatpush3.msra.mxu1 %v2262_v50  ;;  %v2938_v8 = vld [vmem:[%s4617_s11] ss:$0 sm:$0xff] }
 0xc9e   : > { %3223 = vmatprep.subr.mxu0 %v3858_v43  ;;  %3258 = vmatprep.subr.mxu1 %v3858_v43 }
 0xc9f   : > { %3224 = vmatpush3.msra.mxu0 %v2277_v9  ;;  %3225 = vmatprep.mubr.msk.f32.mxu0 %vm3859_vm7, %v3858_v43 }
 0xca0   : > { %3259 = vmatpush3.msra.mxu1 %v2261_v10  ;;  %3226 = vmatmul.mubr.f32.vlgmr.msra.gmra.mxu0 %v2294_v29 }
 0xca1   : > { %3260 = vmatprep.mubr.msk.f32.mxu1 %vm3859_vm7, %v3858_v43  ;;  %3263 = vmatprep.subr.mxu0 %v3858_v43 }
 0xca2   : > { %3298 = vmatprep.subr.mxu1 %v3858_v43  ;;  %3261 = vmatmul.mubr.f32.vlgmr.msra.gmra.mxu1 %v4449_v40 }
 0xca3   : > { %3264 = vmatpush3.msra.mxu0 %v2451_v11  ;;  %3299 = vmatpush3.msra.mxu1 %v2540_v12 }
 0xca4   : > { %3265 = vmatprep.subr.mxu0 %v3858_v43  ;;  %3300 = vmatprep.subr.mxu1 %v3858_v43 }
 0xca5   : > { %3266 = vmatpush3.msra.mxu0 %v2450_v13  ;;  %3301 = vmatpush3.msra.mxu1 %v2539_v21 }
 0xca6   : > { %3267 = vmatprep.subr.mxu0 %v3858_v43  ;;  %3302 = vmatprep.subr.mxu1 %v3858_v43 }
 0xca7   : > { %3268 = vmatpush3.msra.mxu0 %v2449_v15  ;;  %3303 = vmatpush3.msra.mxu1 %v2538_v16 }
 0xca8   : > { %3269 = vmatprep.subr.mxu0 %v3858_v43  ;;  %3304 = vmatprep.subr.mxu1 %v3858_v43 }
 0xca9   : > { %3270 = vmatpush3.msra.mxu0 %v2448_v17  ;;  %3305 = vmatpush3.msra.mxu1 %v2537_v19 }
 0xcaa   : > { %3271 = vmatprep.subr.mxu0 %v3858_v43  ;;  %3306 = vmatprep.subr.mxu1 %v3858_v43 }
 0xcab   : > { %3272 = vmatpush3.msra.mxu0 %v2447_v20  ;;  %3307 = vmatpush3.msra.mxu1 %v2536_v22 }
 0xcac   : > { %3273 = vmatprep.subr.mxu0 %v3858_v43  ;;  %3308 = vmatprep.subr.mxu1 %v3858_v43 }
 0xcad   : > { %3274 = vmatpush3.msra.mxu0 %v2446_v59  ;;  %3309 = vmatpush3.msra.mxu1 %v2535_v23 }
 0xcae   : > { %3275 = vmatprep.subr.mxu0 %v3858_v43  ;;  %3310 = vmatprep.subr.mxu1 %v3858_v43 }
 0xcaf   : > { %3276 = vmatpush3.msra.mxu0 %v2445_v24  ;;  %3311 = vmatpush3.msra.mxu1 %v2534_v25 }
 0xcb0   : > { %3277 = vmatprep.subr.mxu0 %v3858_v43  ;;  %3312 = vmatprep.subr.mxu1 %v3858_v43 }
 0xcb1   : > { %3278 = vmatpush3.msra.mxu0 %v2444_v26  ;;  %3313 = vmatpush3.msra.mxu1 %v2533_v27 }
 0xcb2   : > { %3279 = vmatprep.subr.mxu0 %v3858_v43  ;;  %3314 = vmatprep.subr.mxu1 %v3858_v43 }
 0xcb3   : > { %3280 = vmatpush3.msra.mxu0 %v2443_v62  ;;  %3315 = vmatpush3.msra.mxu1 %v2532_v30 }
 0xcb4   : > { %3281 = vmatprep.subr.mxu0 %v3858_v43  ;;  %3316 = vmatprep.subr.mxu1 %v3858_v43 }
 0xcb5   : > { %3282 = vmatpush3.msra.mxu0 %v2442_v31  ;;  %3317 = vmatpush3.msra.mxu1 %v2531_v3 }
 0xcb6   : > { %3283 = vmatprep.subr.mxu0 %v3858_v43  ;;  %3318 = vmatprep.subr.mxu1 %v3858_v43 }
 0xcb7   : > { %3284 = vmatpush3.msra.mxu0 %v2441_v32  ;;  %3319 = vmatpush3.msra.mxu1 %v2530_v18 }
 0xcb8   : > { %3285 = vmatprep.subr.mxu0 %v3858_v43  ;;  %3320 = vmatprep.subr.mxu1 %v3858_v43 }
 0xcb9   : > { %3286 = vmatpush3.msra.mxu0 %v2440_v33  ;;  %3321 = vmatpush3.msra.mxu1 %v2529_v34 }
 0xcba   : > { %3287 = vmatprep.subr.mxu0 %v3858_v43  ;;  %3322 = vmatprep.subr.mxu1 %v3858_v43 }
 0xcbb   : > { %3288 = vmatpush3.msra.mxu0 %v2439_v35  ;;  %3323 = vmatpush3.msra.mxu1 %v2528_v36 }
 0xcbc   : > { %3289 = vmatprep.subr.mxu0 %v3858_v43  ;;  %3324 = vmatprep.subr.mxu1 %v3858_v43 }
 0xcbd   : > { %3290 = vmatpush3.msra.mxu0 %v2438_v37  ;;  %3325 = vmatpush3.msra.mxu1 %v2527_v14 }
 0xcbe   : > { %3291 = vmatprep.subr.mxu0 %v3858_v43  ;;  %3326 = vmatprep.subr.mxu1 %v3858_v43 }
 0xcbf   : > { %3292 = vmatpush3.msra.mxu0 %v2437_v38  ;;  %3327 = vmatpush3.msra.mxu1 %v2526_v41 }
 0xcc0   : > { %3293 = vmatprep.subr.mxu0 %v3858_v43  ;;  %3328 = vmatprep.subr.mxu1 %v3858_v43 }
 0xcc1   : > { %3294 = vmatpush3.msra.mxu0 %v2436_v42  ;;  %3295 = vmatprep.mubr.msk.f32.mxu0 %vm3859_vm7, %v3858_v43 }
 0xcc2   : > { %3329 = vmatpush3.msra.mxu1 %v2525_v28  ;;  %3330 = vmatprep.mubr.msk.f32.mxu1 %vm3859_vm7, %v3858_v43 }
 0xcc3   : > { %3296 = vmatmul.mubr.f32.vlgmr.msra.gmra.mxu0 %v2452_v44  ;;  %3331 = vmatmul.mubr.f32.vlgmr.msra.gmra.mxu1 %v2541_v39 }
 0xd60   : > { %v2362_v55 = vpop.f32.mrf.mxu0 }
 0xd62   : > { %v2432_v45 = vpop.f32.mrf.mxu1  ;;  %v3227_v46 = vpop.f32.mrf.mxu0 }
 0xd63   : > { %v2433_v48 = vadd.f32 %v2432_v45, %v2362_v55 }
 0xd64   : > { %v3262_v47 = vpop.f32.mrf.mxu1 }
 0xd83   : > { %v2520_v40 = vpop.f32.mrf.mxu0  ;;  %v2609_v49 = vpop.f32.mrf.mxu1 }
 0xd84   : > { %v2524_v51 = vadd.f32 %v2520_v40, %v2433_v48 }
 0xd85   : > { %v3297_v52 = vpop.f32.mrf.mxu0  ;;  %v3332_v53 = vpop.f32.mrf.mxu1 }
 0xd86   : > { %v2613_v56 = vadd.f32 %v2609_v49, %v2524_v51 }
 0xd88   : > { %v2621_v57 = vadd.f32 %v2936_v54, %v2613_v56 }
 0xd8a   : > { %v2625_v43 = vsel %vm2624_vm8, %v2621_v57, 0.0 }
 0xd8b   : > { %2626 = vadd.xlane.f32.xlu0 %v2625_v43 }
 0xe14   : > { %v2627_v58 = vpop.xlane.xlu0 %2626 }
 0xe15   : > { %v2628_v60 = vmul.f32 0.0078125, %v2627_v58 }
 0xe17   : > { %v2629_v61 = vsub.f32 %v2621_v57, %v2628_v60 }
 0xe19   : > { %v2630_v63 = vmul.f32 %v2629_v61, %v2629_v61 }
 0xe1b   : > { %v2631_v0 = vsel %vm2624_vm8, %v2630_v63, 0.0 }
 0xe1c   : > { %2632 = vadd.xlane.f32.xlu0 %v2631_v0 }
 0xea5   : > { %v2633_v1 = vpop.xlane.xlu0 %2632 }
 0xea6   : > { %v2634_v2 = vmul.f32 0.0078125, %v2633_v1 }
 0xea8   : > { %v2635_v4 = vadd.f32 1e-05, %v2634_v2 }
 0xeaa   : > { %3593 = vrsqrt.f32 %v2635_v4 }
 0xeb7   : > { %v3594_v5 = vpop.eup %3593 }
 0xeb8   : > { %v2637_v7 = vmul.f32 %v3594_v5, %v2629_v61 }
 0xeba   : > { %v2644_v50 = vmul.f32 %v2937_v6, %v2637_v7 }
 0xebc   : > { %v2651_v9 = vadd.f32 %v2938_v8, %v2644_v50 }
 0xebe   : > { %2652 = vst [vmem:[#allocation14] sm:$0x3] %v2651_v9 }
 0xebf PF: > { %p3377_p13 = scmp.eq.s32.totalorder %s4055_s12, 1  ;;  %s3860_s13 = smov [#allocation14]  }
 0xec0   : > { %s2660_s21 = sshll.u32 %s3860_s13, 4  ;;  %s2661_s21 = int_to_ptr.vmem [resolvable:$true] %s2660_s21 }
 0xec1   : > { %s3761_s20 = scalar_lea.vmem %s2661_s21, 32  ;;  %p3768_p4 = scmp.lt.s32.totalorder %s2661_s21, %s2661_s21 }
 0xec2   : > { %p3762_p0 = scmp.ne.s32.totalorder %s2661_s21, %s3761_s20  ;;  %p3769_p6 = scmp.lt.s32.totalorder %s3761_s20, %s3761_s20 }
 0xec4   : > { %p3763_p1 = pnand %p3762_p0, %p3377_p13  ;;  %p3770_p8 = por %p3769_p6, %p3768_p4 }
 0xec6   : > { %p3764_p2 = pneg %p3763_p1 }
 0xec8   : > { %p3771_p12 = pnand %p3770_p8, %p3764_p2 }
 0xeca   : > { %3774 = shalt.err (!%p3771_p12)
}
 0xecb   : > { %s4618_s10 = sld [smem:[#allocation31_spill]] }
 0xed1   : > { %3351 = dma.vmem_to_hbm [thread:$0]  (%p3377_p13), %s2661_s21, 32, %s4618_s10, [#allocation5]  }
 0xed2   : > { %3818 = dma.done.wait (%p3377_p13), [#allocation5], 32  }
 0xed3   : > { %3820 = vsyncadd (%p3377_p13), [#allocation5], 4294967264 }
 0xed4 PF: > { %s4619_s24 = sld [smem:[#allocation21_spill]]  ;;  %s4622_s21 = smov %s3827_s22 }
 0xed5   : > { %s4620_s1 = sld [smem:[#allocation20_spill]] }
 0xed6   : > { %s4621_s23 = sld [smem:[#allocation22_spill]] }
 0xeda   : > { %p30_p3 = scmp.ge.s32.totalorder %s4619_s24, 4  }
 0xedb   : > { %s4623_s22 = smov %s4620_s1 }
 0xedc   :  { %32 = sbr.rel (!%p30_p3) target bundleno = 19 (0x13), region = 165 }
 0xee1   :  { %2673 = vsyncpa [#allocation4], 1 }
 0xee2   :  { %2675 = vsyncpa [#allocation4 + $0x1], 1 }
 0xee3   :  { %2676 = vsyncpa [#allocation7], 1 }
 0xee4   :  { %2678 = vsyncpa [#allocation7 + $0x1], 1 }
 0xee5   :  { %2679 = vsyncpa [#allocation10], 1 }
 0xee6   :  { %2681 = vsyncpa [#allocation10 + $0x1], 1 }
 0xee7   :  { %2682 = vsyncpa [#allocation13], 1 }
 0xee8   :  { %2683 = vsyncpa [#allocation5], 1 }
 0xee9   :  { %2685 = vsyncpa [#allocation5 + $0x1], 1 }

</bundles_post_ra>
